<compile_context>
chip_gen: v7x
topology: tpu7x:2x2x1
jax: 0.10.0
libtpu: 0.0.40
codegen_flags: <defaults>
</compile_context>

<pallas_src>
import jax
import jax.numpy as jnp
from jax import lax
from jax.experimental import pallas as pl
from jax.experimental.pallas import tpu as pltpu

BN_EPS = 1e-5
# Comfortably above what these tiles need, and below v7x's 64 MiB physical VMEM
# (v5e/v6e have 128 MiB).
VMEM_LIMIT_BYTES = 48 * 1024 * 1024


def _pick_tile(total, target, multiple):
    """Largest tile <= target that divides `total` and is a multiple of
    `multiple` (falls back to the full extent, which is always legal)."""
    t = min(target, total)
    t -= t % multiple
    while t >= multiple and total % t:
        t -= multiple
    return t if (t >= multiple and total % t == 0) else total


# ---------------------------------------------------------------------------
# Kernel 1: im2col GEMM (bf16 -> f32) + per-tile partial BatchNorm statistics.
# ---------------------------------------------------------------------------
def conv_gemm_stats_kernel(p_ref, w_ref, conv_ref, stats_ref):
    """p_ref:(TR,9*Cin) bf16, w_ref:(9*Cin,Cout) bf16,
    conv_ref:(TR,Cout) f32, stats_ref:(1,2,Cout) f32 = [sum, sum_sq]."""
    acc = jnp.dot(p_ref[...], w_ref[...], preferred_element_type=jnp.float32)
    conv_ref[...] = acc
    stats_ref[0, 0:1, :] = jnp.sum(acc, axis=0, keepdims=True)
    stats_ref[0, 1:2, :] = jnp.sum(acc * acc, axis=0, keepdims=True)


def conv_gemm_stats(patches_bf16, w2d_bf16, *, row_tile_target=512):
    rows, k = patches_bf16.shape
    cout = w2d_bf16.shape[-1]
    tr = _pick_tile(rows, row_tile_target, 16)   # 16: bf16 sublane packing
    grid = rows // tr

    grid_spec = pltpu.PrefetchScalarGridSpec(
        num_scalar_prefetch=0,
        grid=(grid,),
        in_specs=[
            pl.BlockSpec((tr, k), lambda i: (i, 0)),
            pl.BlockSpec((k, cout), lambda i: (0, 0)),
        ],
        out_specs=[
            pl.BlockSpec((tr, cout), lambda i: (i, 0)),
            pl.BlockSpec((1, 2, cout), lambda i: (i, 0, 0)),
        ],
    )
    return pl.pallas_call(
        conv_gemm_stats_kernel,
        out_shape=(
            jax.ShapeDtypeStruct((rows, cout), jnp.float32),
            jax.ShapeDtypeStruct((grid, 2, cout), jnp.float32),
        ),
        grid_spec=grid_spec,
        compiler_params=pltpu.CompilerParams(
            dimension_semantics=("parallel",),
            vmem_limit_bytes=VMEM_LIMIT_BYTES,
        ),
    )(patches_bf16, w2d_bf16)


# ---------------------------------------------------------------------------
# Kernel 2: lane-dense BN affine (+ optional residual) + ReLU epilogue.
# ---------------------------------------------------------------------------
def bn_relu_kernel(y_ref, scale_ref, shift_ref, out_ref):
    y = y_ref[...] * scale_ref[...] + shift_ref[...]
    out_ref[...] = jnp.maximum(y, 0.0).astype(out_ref.dtype)


def bn_add_relu_kernel(y_ref, scale_ref, shift_ref, res_ref, out_ref):
    y = y_ref[...] * scale_ref[...] + shift_ref[...] + res_ref[...]
    out_ref[...] = jnp.maximum(y, 0.0).astype(out_ref.dtype)


def bn_act(slab, scale_row, shift_row, res_slab=None, *,
           out_dtype=jnp.float32, row_tile_target=256):
    rows, wc = slab.shape
    sub_mult = 16 if out_dtype == jnp.bfloat16 else 8
    tr = _pick_tile(rows, row_tile_target, sub_mult)
    grid = rows // tr

    row_spec = pl.BlockSpec((tr, wc), lambda i: (i, 0))
    vec_spec = pl.BlockSpec((1, wc), lambda i: (0, 0))

    if res_slab is None:
        kernel = bn_relu_kernel
        in_specs = [row_spec, vec_spec, vec_spec]
        args = (slab, scale_row, shift_row)
    else:
        kernel = bn_add_relu_kernel
        in_specs = [row_spec, vec_spec, vec_spec, row_spec]
        args = (slab, scale_row, shift_row, res_slab)

    return pl.pallas_call(
        kernel,
        out_shape=jax.ShapeDtypeStruct((rows, wc), out_dtype),
        grid_spec=pltpu.PrefetchScalarGridSpec(
            num_scalar_prefetch=0,
            grid=(grid,),
            in_specs=in_specs,
            out_specs=row_spec,
        ),
        compiler_params=pltpu.CompilerParams(
            dimension_semantics=("parallel",),
            vmem_limit_bytes=VMEM_LIMIT_BYTES,
        ),
    )(*args)


# ---------------------------------------------------------------------------
# One "conv3x3 -> BatchNorm(train) -> (+res) -> ReLU" stage.
# ---------------------------------------------------------------------------
def conv_bn_relu_stage(x_nhwc, w_hwio, gamma, beta, res_nhwc=None,
                       out_dtype=jnp.float32):
    n, h, w, cin = x_nhwc.shape
    cout = w_hwio.shape[-1]

    # pad + im2col in bf16 (XLA glue; heavy GEMM / BN / activation is Pallas).
    x_bf16 = x_nhwc if x_nhwc.dtype == jnp.bfloat16 else x_nhwc.astype(jnp.bfloat16)
    xpad = jnp.pad(x_bf16, ((0, 0), (1, 1), (1, 1), (0, 0)))
    cols = [xpad[:, dh:dh + h, dw:dw + w, :] for dh in range(3) for dw in range(3)]
    patches = jnp.concatenate(cols, axis=-1).reshape(n * h * w, 9 * cin)
    w2d = w_hwio.reshape(9 * cin, cout).astype(jnp.bfloat16)

    conv_raw, part_stats = conv_gemm_stats(patches, w2d)

    # Exact global (training-mode) BatchNorm statistics over (N, H, W).
    tot = jnp.sum(part_stats, axis=0)                      # (2, Cout)
    cnt = jnp.float32(n * h * w)
    mean = tot[0] / cnt
    var = jnp.maximum(tot[1] / cnt - mean * mean, 0.0)     # biased variance
    scale = gamma * lax.rsqrt(var + BN_EPS)                # (Cout,)
    shift = beta - mean * scale

    # Lane-dense epilogue slab: last dim = W*Cout (multiple of 128 here).
    slab = conv_raw.reshape(n * h, w * cout)
    scale_row = jnp.tile(scale, w).reshape(1, w * cout)
    shift_row = jnp.tile(shift, w).reshape(1, w * cout)
    res_slab = None if res_nhwc is None else res_nhwc.reshape(n * h, w * cout)

    out_slab = bn_act(slab, scale_row, shift_row, res_slab, out_dtype=out_dtype)
    return out_slab.reshape(n, h, w, cout)


def basic_block_forward(x_nchw, params):
    """BasicBlock.forward (stride=1, downsample=None, training-mode BN)."""
    w1, g1, b1, w2, g2, b2 = params
    x = jnp.transpose(x_nchw, (0, 2, 3, 1)).astype(jnp.float32)   # NCHW -> NHWC
    # Stage 1 output is only consumed by the bf16 im2col of stage 2 -> emit bf16.
    h1 = conv_bn_relu_stage(x, w1, g1, b1, res_nhwc=None,
                            out_dtype=jnp.bfloat16)               # relu(bn1(conv1(x)))
    h2 = conv_bn_relu_stage(h1, w2, g2, b2, res_nhwc=x,
                            out_dtype=jnp.float32)                # relu(bn2(conv2) + x)
    return jnp.transpose(h2, (0, 3, 1, 2))                        # NHWC -> NCHW


# ---------------------------------------------------------------------------
# Pure-JAX reference mirroring the PyTorch module (training-mode BatchNorm).
# ---------------------------------------------------------------------------
def ref_forward(x_nchw, params):
    w1, g1, b1, w2, g2, b2 = params

    def conv(x, w):
        return lax.conv_general_dilated(
            x, w, window_strides=(1, 1), padding=((1, 1), (1, 1)),
            dimension_numbers=("NCHW", "HWIO", "NCHW"))

    def bn(x, g, b):
        mean = jnp.mean(x, axis=(0, 2, 3), keepdims=True)
        var = jnp.mean((x - mean) ** 2, axis=(0, 2, 3), keepdims=True)
        xn = (x - mean) * lax.rsqrt(var + BN_EPS)
        return xn * g.reshape(1, -1, 1, 1) + b.reshape(1, -1, 1, 1)

    out = jax.nn.relu(bn(conv(x_nchw, w1), g1, b1))
    out = jax.nn.relu(bn(conv(out, w2), g2, b2) + x_nchw)
    return out


if __name__ == "__main__":
    key = jax.random.PRNGKey(0)
    N, C, H, W = 2, 16, 16, 16       # inplanes = planes = 16, stride = 1
    inplanes = planes = C

    k_x, k_w1, k_w2, k_g1, k_b1, k_g2, k_b2 = jax.random.split(key, 7)
    x = jax.random.normal(k_x, (N, C, H, W), jnp.float32)

    # conv weights: PyTorch (Cout, Cin, 3, 3) -> kernel layout HWIO (3,3,Cin,Cout)
    w1_t = jax.random.normal(k_w1, (planes, inplanes, 3, 3), jnp.float32) * (2.0 / (9 * inplanes)) ** 0.5
    w2_t = jax.random.normal(k_w2, (planes, planes, 3, 3), jnp.float32) * (2.0 / (9 * planes)) ** 0.5
    w1 = jnp.transpose(w1_t, (2, 3, 1, 0))
    w2 = jnp.transpose(w2_t, (2, 3, 1, 0))

    g1 = 1.0 + 0.1 * jax.random.normal(k_g1, (planes,), jnp.float32)
    b1 = 0.1 * jax.random.normal(k_b1, (planes,), jnp.float32)
    g2 = 1.0 + 0.1 * jax.random.normal(k_g2, (planes,), jnp.float32)
    b2 = 0.1 * jax.random.normal(k_b2, (planes,), jnp.float32)

    params = (w1, g1, b1, w2, g2, b2)

    fwd = jax.jit(basic_block_forward)
    out = jax.block_until_ready(fwd(x, params))
    ref = jax.block_until_ready(ref_forward(x, params))

    assert out.shape == (N, C, H, W)
    max_err = float(jnp.max(jnp.abs(out - ref)))
    # bf16 MXU inputs (f32 accumulate) => relax tolerance vs. the pure-f32 ref.
    assert jnp.allclose(out, ref, rtol=3e-2, atol=3e-2), max_err
    print("KERNEL_OK")
</pallas_src>

<mosaic_0001>
module attributes {stable_mosaic.version = 11 : i64} {
  func.func @conv_gemm_stats_kernel(%arg0: i32, %arg1: memref<512x144xbf16, #tpu.memory_space<vmem>>, %arg2: memref<144x16xbf16, #tpu.memory_space<vmem>>, %arg3: memref<512x16xf32, #tpu.memory_space<vmem>>, %arg4: memref<1x2x16xf32, #tpu.memory_space<vmem>>) attributes {dimension_semantics = [#tpu.dimension_semantics<parallel>], iteration_bounds = array<i64: 1>, scalar_prefetch = 0 : i64, scratch_operands = 0 : i64, tpu.core_type = #tpu.core_type<tc>, window_params = [{transform_indices = @transform_0, window_bounds = array<i64: 512, 144>}, {pipeline_mode = #tpu.pipeline_mode<synchronous>, transform_indices = @transform_1, window_bounds = array<i64: 144, 16>}, {transform_indices = @transform_2, window_bounds = array<i64: 512, 16>}, {transform_indices = @transform_3, window_bounds = array<i64: 1, 2, 16>}]} {
    %c0 = arith.constant 0 : index
    %c0_0 = arith.constant 0 : index
    %0 = vector.load %arg1[%c0, %c0_0] : memref<512x144xbf16, #tpu.memory_space<vmem>>, vector<512x144xbf16>
    %c0_1 = arith.constant 0 : index
    %c0_2 = arith.constant 0 : index
    %1 = vector.load %arg2[%c0_1, %c0_2] : memref<144x16xbf16, #tpu.memory_space<vmem>>, vector<144x16xbf16>
    %cst = arith.constant dense<0.000000e+00> : vector<512x16xf32>
    %2 = tpu.matmul %0, %1, %cst {dimension_numbers = #tpu.dot_dimension_numbers<[1], [0], [0], [1], [0, 0, 1, 1], [], []>} : vector<512x144xbf16>, vector<144x16xbf16>, vector<512x16xf32> -> vector<512x16xf32>
    %c0_3 = arith.constant 0 : index
    %c0_4 = arith.constant 0 : index
    %3 = vector.load %arg3[%c0_3, %c0_4] : memref<512x16xf32, #tpu.memory_space<vmem>>, vector<512x16xf32>
    tpu.vector_store %arg3[%c0_3, %c0_4], %2 {strides = array<i32>} : memref<512x16xf32, #tpu.memory_space<vmem>>, vector<512x16xf32>,
    %cst_5 = arith.constant dense<0.000000e+00> : vector<16xf32>
    %4 = vector.multi_reduction <add>, %2, %cst_5 [0] : vector<512x16xf32> to vector<16xf32>
    %5 = vector.shape_cast %4 : vector<16xf32> to vector<1x16xf32>
    %c0_6 = arith.constant 0 : index
    %c0_7 = arith.constant 0 : index
    %c0_8 = arith.constant 0 : index
    %6 = vector.load %arg4[%c0_6, %c0_7, %c0_8] : memref<1x2x16xf32, #tpu.memory_space<vmem>>, vector<1x1x16xf32>
    %7 = vector.shape_cast %6 : vector<1x1x16xf32> to vector<1x16xf32>
    %8 = vector.shape_cast %5 : vector<1x16xf32> to vector<1x1x16xf32>
    tpu.vector_store %arg4[%c0_6, %c0_7, %c0_8], %8 {strides = array<i32>} : memref<1x2x16xf32, #tpu.memory_space<vmem>>, vector<1x1x16xf32>,
    %9 = arith.mulf %2, %2 : vector<512x16xf32>
    %cst_9 = arith.constant dense<0.000000e+00> : vector<16xf32>
    %10 = vector.multi_reduction <add>, %9, %cst_9 [0] : vector<512x16xf32> to vector<16xf32>
    %11 = vector.shape_cast %10 : vector<16xf32> to vector<1x16xf32>
    %c0_10 = arith.constant 0 : index
    %c1 = arith.constant 1 : index
    %c0_11 = arith.constant 0 : index
    %12 = vector.load %arg4[%c0_10, %c1, %c0_11] : memref<1x2x16xf32, #tpu.memory_space<vmem>>, vector<1x1x16xf32>
    %13 = vector.shape_cast %12 : vector<1x1x16xf32> to vector<1x16xf32>
    %14 = vector.shape_cast %11 : vector<1x16xf32> to vector<1x1x16xf32>
    tpu.vector_store %arg4[%c0_10, %c1, %c0_11], %14 {strides = array<i32>} : memref<1x2x16xf32, #tpu.memory_space<vmem>>, vector<1x1x16xf32>,
    return
  }
  func.func @transform_0(%arg0: i32) -> (i32, i32) {
    %c0_i32 = arith.constant 0 : i32
    %c0_i32_0 = arith.constant 0 : i32
    return %arg0, %c0_i32 : i32, i32
  }
  func.func @transform_1(%arg0: i32) -> (i32, i32) {
    %c0_i32 = arith.constant 0 : i32
    %c0_i32_0 = arith.constant 0 : i32
    %c0_i32_1 = arith.constant 0 : i32
    return %c0_i32, %c0_i32_0 : i32, i32
  }
  func.func @transform_2(%arg0: i32) -> (i32, i32) {
    %c0_i32 = arith.constant 0 : i32
    %c0_i32_0 = arith.constant 0 : i32
    return %arg0, %c0_i32 : i32, i32
  }
  func.func @transform_3(%arg0: i32) -> (i32, i32, i32) {
    %c0_i32 = arith.constant 0 : i32
    %c0_i32_0 = arith.constant 0 : i32
    %c0_i32_1 = arith.constant 0 : i32
    return %arg0, %c0_i32, %c0_i32_0 : i32, i32, i32
  }
}

module attributes {stable_mosaic.version = 11 : i64} {
  func.func @bn_relu_kernel(%arg0: i32, %arg1: memref<32x256xf32, #tpu.memory_space<vmem>>, %arg2: memref<1x256xf32, #tpu.memory_space<vmem>>, %arg3: memref<1x256xf32, #tpu.memory_space<vmem>>, %arg4: memref<32x256xbf16, #tpu.memory_space<vmem>>) attributes {dimension_semantics = [#tpu.dimension_semantics<parallel>], iteration_bounds = array<i64: 1>, scalar_prefetch = 0 : i64, scratch_operands = 0 : i64, tpu.core_type = #tpu.core_type<tc>, window_params = [{transform_indices = @transform_0, window_bounds = array<i64: 32, 256>}, {pipeline_mode = #tpu.pipeline_mode<synchronous>, transform_indices = @transform_1, window_bounds = array<i64: 1, 256>}, {pipeline_mode = #tpu.pipeline_mode<synchronous>, transform_indices = @transform_2, window_bounds = array<i64: 1, 256>}, {transform_indices = @transform_3, window_bounds = array<i64: 32, 256>}]} {
    %c0 = arith.constant 0 : index
    %c0_0 = arith.constant 0 : index
    %0 = vector.load %arg1[%c0, %c0_0] : memref<32x256xf32, #tpu.memory_space<vmem>>, vector<32x256xf32>
    %c0_1 = arith.constant 0 : index
    %c0_2 = arith.constant 0 : index
    %1 = vector.load %arg2[%c0_1, %c0_2] : memref<1x256xf32, #tpu.memory_space<vmem>>, vector<1x256xf32>
    %2 = vector.broadcast %1 : vector<1x256xf32> to vector<32x256xf32>
    %3 = arith.mulf %0, %2 : vector<32x256xf32>
    %c0_3 = arith.constant 0 : index
    %c0_4 = arith.constant 0 : index
    %4 = vector.load %arg3[%c0_3, %c0_4] : memref<1x256xf32, #tpu.memory_space<vmem>>, vector<1x256xf32>
    %5 = vector.broadcast %4 : vector<1x256xf32> to vector<32x256xf32>
    %6 = arith.addf %3, %5 : vector<32x256xf32>
    %cst = arith.constant 0.000000e+00 : f32
    %7 = vector.broadcast %cst : f32 to vector<32x256xf32>
    %8 = arith.maximumf %6, %7 : vector<32x256xf32>
    %9 = arith.truncf %8 : vector<32x256xf32> to vector<32x256xbf16>
    %c0_5 = arith.constant 0 : index
    %c0_6 = arith.constant 0 : index
    %10 = vector.load %arg4[%c0_5, %c0_6] : memref<32x256xbf16, #tpu.memory_space<vmem>>, vector<32x256xbf16>
    tpu.vector_store %arg4[%c0_5, %c0_6], %9 {strides = array<i32>} : memref<32x256xbf16, #tpu.memory_space<vmem>>, vector<32x256xbf16>,
    return
  }
  func.func @transform_0(%arg0: i32) -> (i32, i32) {
    %c0_i32 = arith.constant 0 : i32
    %c0_i32_0 = arith.constant 0 : i32
    return %arg0, %c0_i32 : i32, i32
  }
  func.func @transform_1(%arg0: i32) -> (i32, i32) {
    %c0_i32 = arith.constant 0 : i32
    %c0_i32_0 = arith.constant 0 : i32
    %c0_i32_1 = arith.constant 0 : i32
    return %c0_i32, %c0_i32_0 : i32, i32
  }
  func.func @transform_2(%arg0: i32) -> (i32, i32) {
    %c0_i32 = arith.constant 0 : i32
    %c0_i32_0 = arith.constant 0 : i32
    %c0_i32_1 = arith.constant 0 : i32
    return %c0_i32, %c0_i32_0 : i32, i32
  }
  func.func @transform_3(%arg0: i32) -> (i32, i32) {
    %c0_i32 = arith.constant 0 : i32
    %c0_i32_0 = arith.constant 0 : i32
    return %arg0, %c0_i32 : i32, i32
  }
}

module attributes {stable_mosaic.version = 11 : i64} {
  func.func @bn_add_relu_kernel(%arg0: i32, %arg1: memref<32x256xf32, #tpu.memory_space<vmem>>, %arg2: memref<1x256xf32, #tpu.memory_space<vmem>>, %arg3: memref<1x256xf32, #tpu.memory_space<vmem>>, %arg4: memref<32x256xf32, #tpu.memory_space<vmem>>, %arg5: memref<32x256xf32, #tpu.memory_space<vmem>>) attributes {dimension_semantics = [#tpu.dimension_semantics<parallel>], iteration_bounds = array<i64: 1>, scalar_prefetch = 0 : i64, scratch_operands = 0 : i64, tpu.core_type = #tpu.core_type<tc>, window_params = [{transform_indices = @transform_0, window_bounds = array<i64: 32, 256>}, {pipeline_mode = #tpu.pipeline_mode<synchronous>, transform_indices = @transform_1, window_bounds = array<i64: 1, 256>}, {pipeline_mode = #tpu.pipeline_mode<synchronous>, transform_indices = @transform_2, window_bounds = array<i64: 1, 256>}, {transform_indices = @transform_3, window_bounds = array<i64: 32, 256>}, {transform_indices = @transform_4, window_bounds = array<i64: 32, 256>}]} {
    %c0 = arith.constant 0 : index
    %c0_0 = arith.constant 0 : index
    %0 = vector.load %arg1[%c0, %c0_0] : memref<32x256xf32, #tpu.memory_space<vmem>>, vector<32x256xf32>
    %c0_1 = arith.constant 0 : index
    %c0_2 = arith.constant 0 : index
    %1 = vector.load %arg2[%c0_1, %c0_2] : memref<1x256xf32, #tpu.memory_space<vmem>>, vector<1x256xf32>
    %2 = vector.broadcast %1 : vector<1x256xf32> to vector<32x256xf32>
    %3 = arith.mulf %0, %2 : vector<32x256xf32>
    %c0_3 = arith.constant 0 : index
    %c0_4 = arith.constant 0 : index
    %4 = vector.load %arg3[%c0_3, %c0_4] : memref<1x256xf32, #tpu.memory_space<vmem>>, vector<1x256xf32>
    %5 = vector.broadcast %4 : vector<1x256xf32> to vector<32x256xf32>
    %6 = arith.addf %3, %5 : vector<32x256xf32>
    %c0_5 = arith.constant 0 : index
    %c0_6 = arith.constant 0 : index
    %7 = vector.load %arg4[%c0_5, %c0_6] : memref<32x256xf32, #tpu.memory_space<vmem>>, vector<32x256xf32>
    %8 = arith.addf %6, %7 : vector<32x256xf32>
    %cst = arith.constant 0.000000e+00 : f32
    %9 = vector.broadcast %cst : f32 to vector<32x256xf32>
    %10 = arith.maximumf %8, %9 : vector<32x256xf32>
    %c0_7 = arith.constant 0 : index
    %c0_8 = arith.constant 0 : index
    %11 = vector.load %arg5[%c0_7, %c0_8] : memref<32x256xf32, #tpu.memory_space<vmem>>, vector<32x256xf32>
    tpu.vector_store %arg5[%c0_7, %c0_8], %10 {strides = array<i32>} : memref<32x256xf32, #tpu.memory_space<vmem>>, vector<32x256xf32>,
    return
  }
  func.func @transform_0(%arg0: i32) -> (i32, i32) {
    %c0_i32 = arith.constant 0 : i32
    %c0_i32_0 = arith.constant 0 : i32
    return %arg0, %c0_i32 : i32, i32
  }
  func.func @transform_1(%arg0: i32) -> (i32, i32) {
    %c0_i32 = arith.constant 0 : i32
    %c0_i32_0 = arith.constant 0 : i32
    %c0_i32_1 = arith.constant 0 : i32
    return %c0_i32, %c0_i32_0 : i32, i32
  }
  func.func @transform_2(%arg0: i32) -> (i32, i32) {
    %c0_i32 = arith.constant 0 : i32
    %c0_i32_0 = arith.constant 0 : i32
    %c0_i32_1 = arith.constant 0 : i32
    return %c0_i32, %c0_i32_0 : i32, i32
  }
  func.func @transform_3(%arg0: i32) -> (i32, i32) {
    %c0_i32 = arith.constant 0 : i32
    %c0_i32_0 = arith.constant 0 : i32
    return %arg0, %c0_i32 : i32, i32
  }
  func.func @transform_4(%arg0: i32) -> (i32, i32) {
    %c0_i32 = arith.constant 0 : i32
    %c0_i32_0 = arith.constant 0 : i32
    return %arg0, %c0_i32 : i32, i32
  }
}

</mosaic_0001>

<bundles_post_ra>
// kernel: tile.28
= control target key start
LH: loop header
LB: loop body
LE: loop exit
PB: predicated region body
PF: predicated region fallthrough
CT: control target
= control target key end

     0   :  { %s28_s0 = inlined_call_operand.vmem [shape: f32[16], index: 0, kind: input, shape index: {}]   ;;  %s29_s1 = inlined_call_operand.vmem [shape: f32[16,16], index: 1, kind: output, shape index: {}]  }
   0x1   :  { %v4_v0 = vld [vmem:[%s28_s0] ss:$0 sm:$0xff] }
   0x2   :  { %5 = vst [vmem:[%s29_s1] sm:$0xff] %v4_v0  ;;  %8 = vst [vmem:[%s29_s1 + $0x8] sm:$0xff] %v4_v0 }

// kernel: tile.29
= control target key start
LH: loop header
LB: loop body
LE: loop exit
PB: predicated region body
PF: predicated region fallthrough
CT: control target
= control target key end

     0   :  { %s7_s6 = smov 3  ;;  %s21_s9 = smov 3  ;;  %vm4_vm0 = vcmask 130048   ;;  %vm11_vm1 = vcmask 1048448   ;;  %vm18_vm2 = vcmask 917248   ;;  %vm25_vm3 = vcmask 786048   ;;  %s128_s0 = inlined_call_operand.vmem [shape: f32[16,16], index: 0, kind: input, shape index: {}]   ;;  %s129_s1 = inlined_call_operand.vmem [shape: f32[1,256], index: 1, kind: output, shape index: {}]  }
   0x1   :  { %v66_v0 = vld [vmem:[%s128_s0 + $0x7] ss:$8 sm:%s7_s6]   ;;  %s81_s10 = smov 112   ;;  %v68_v1 = vld [vmem:[%s128_s0 + $0x5] ss:$8 sm:%s21_s9]   ;;  %s14_s13 = smov 3 }
   0x2   :  { %9 = vrot.lane.b32.xlu0 %v66_v0, %s81_s10  ;;  %s82_s14 = smov 80   ;;  %v67_v2 = vld [vmem:[%s128_s0 + $0x6] ss:$8 sm:%s14_s13]   ;;  %s28_s17 = smov 3  ;;  %vm32_vm4 = vcmask 654848   ;;  %vm39_vm5 = vcmask 523648  }
   0x3   :  { %23 = vrot.lane.b32.xlu1 %v68_v1, %s82_s14  ;;  %v69_v3 = vld [vmem:[%s128_s0 + $0x4] ss:$8 sm:%s28_s17]   ;;  %s35_s20 = smov 3  ;;  %s42_s21 = smov 3  ;;  %vm46_vm6 = vcmask 392448   ;;  %vm53_vm7 = vcmask 261248  }
   0x4   :  { %s83_s22 = smov 96   ;;  %s84_s23 = smov 64   ;;  %v70_v4 = vld [vmem:[%s128_s0 + $0x3] ss:$8 sm:%s35_s20]   ;;  %v71_v5 = vld [vmem:[%s128_s0 + $0x2] ss:$8 sm:%s42_s21]  }
   0x5   :  { %s2_s26 = smov 3  ;;  %s49_s29 = smov 3 }
   0x6   :  { %16 = vrot.lane.b32.xlu0 %v67_v2, %s83_s22  ;;  %v3_v6 = vld [vmem:[%s128_s0] ss:$8 sm:%s2_s26]   ;;  %s85_s3 = smov 48   ;;  %s86_s4 = smov 32  }
   0x7   :  { %30 = vrot.lane.b32.xlu1 %v69_v3, %s84_s23  ;;  %5 = vst.msk [vmem:[#allocation0] ss:$8 sm:$0x3] %vm4_vm0, %v3_v6   ;;  %v72_v7 = vld [vmem:[%s128_s0 + $0x1] ss:$8 sm:%s49_s29]   ;;  %s87_s0 = smov 16  }
   0xa   :  { %37 = vrot.lane.b32.xlu0 %v70_v4, %s85_s3 }
   0xb   :  { %44 = vrot.lane.b32.xlu1 %v71_v5, %s86_s4 }
   0xe   :  { %51 = vrot.lane.b32.xlu0 %v72_v7, %s87_s0 }
  0x74   :  { %v10_v8 = vpop.permute.xlu0 %9  }
  0x75   :  { %12 = vst.msk [vmem:[#allocation0] ss:$8 sm:$0x3] %vm11_vm1, %v10_v8   ;;  %v24_v9 = vpop.permute.xlu1 %23  }
  0x78   :  { %v17_v10 = vpop.permute.xlu0 %16  }
  0x79   :  { %19 = vst.msk [vmem:[#allocation0] ss:$8 sm:$0x3] %vm18_vm2, %v17_v10   ;;  %v31_v11 = vpop.permute.xlu1 %30  }
  0x7a   :  { %26 = vst.msk [vmem:[#allocation0] ss:$8 sm:$0x3] %vm25_vm3, %v24_v9  }
  0x7b   :  { %33 = vst.msk [vmem:[#allocation0] ss:$8 sm:$0x3] %vm32_vm4, %v31_v11  }
  0x7c   :  { %v38_v12 = vpop.permute.xlu0 %37  }
  0x7d   :  { %40 = vst.msk [vmem:[#allocation0] ss:$8 sm:$0x3] %vm39_vm5, %v38_v12   ;;  %v45_v13 = vpop.permute.xlu1 %44  }
  0x7e   :  { %47 = vst.msk [vmem:[#allocation0] ss:$8 sm:$0x3] %vm46_vm6, %v45_v13  }
  0x80   :  { %v52_v14 = vpop.permute.xlu0 %51  }
  0x81   :  { %54 = vst.msk [vmem:[#allocation0] ss:$8 sm:$0x3] %vm53_vm7, %v52_v14  }
  0x88   :  { %v58_v15 = vld [vmem:[#allocation0] sm:$0x1]  ;;  %v62_v16 = vld [vmem:[#allocation0 + $0x8] sm:$0x1] }
  0x89   :  { %60 = vst [vmem:[%s129_s1] sm:$0x1] %v58_v15  ;;  %73 = vst [vmem:[%s129_s1 + $0x1] sm:$0x1] %v62_v16 }

// kernel: basic_block_forward.5
= control target key start
LH: loop header
LB: loop body
LE: loop exit
PB: predicated region body
PF: predicated region fallthrough
CT: control target
= control target key end

     0   :  { %v24_v0 = vlaneseq  ;;  %s172_s1 = inlined_call_operand.vmem [shape: f32[1,256], index: 1, kind: input, shape index: {}]   ;;  %s173_s2 = inlined_call_operand.vmem [shape: f32[1,256], index: 2, kind: input, shape index: {}]   ;;  %s174_s0 = inlined_call_operand.vmem [shape: f32[32,256], index: 0, kind: input, shape index: {}]   ;;  %s175_s3 = inlined_call_operand.vmem [shape: bf16[32,256], index: 3, kind: output, shape index: {}]  }
   0x1   :  { %v22_v2 = vld [vmem:[%s172_s1] sm:$0x3]  ;;  %v15_v5 = vld [vmem:[%s174_s0 + $0x8] sm:$0xff]  ;;  %v16_v8 = vld [vmem:[%s174_s0 + $0x10] sm:$0xff] }
   0x2   :  { %v25_v1 = vshrl.u32 %v24_v0, 7  ;;  %v42_v3 = vld [vmem:[%s173_s2] sm:$0x3]  ;;  %v17_v9 = vld [vmem:[%s174_s0 + $0x18] sm:$0xff]  ;;  %v19_v15 = vld [vmem:[%s174_s0 + $0x28] sm:$0xff] }
   0x3   :  { %v14_v4 = vld [vmem:[%s174_s0] sm:$0xff]  ;;  %v20_v16 = vld [vmem:[%s174_s0 + $0x30] sm:$0xff]  ;;  %v21_v17 = vld [vmem:[%s174_s0 + $0x38] sm:$0xff] }
   0x4   :  { %v26_v6 = vsub.s32 0, %v25_v1  ;;  %v30_v7 = vsub.s32 1, %v25_v1  ;;  %v18_v10 = vld [vmem:[%s174_s0 + $0x20] sm:$0xff] }
   0x6   :  { %v27_v11 = vrot.slane %v22_v2, %v26_v6  ;;  %v31_v12 = vrot.slane %v22_v2, %v30_v7  ;;  %v47_v13 = vrot.slane %v42_v3, %v26_v6  ;;  %v51_v14 = vrot.slane %v42_v3, %v30_v7 }
   0x8   :  { %v34_v18 = vmul.f32 %v27_v11, %v14_v4  ;;  %v35_v19 = vmul.f32 %v31_v12, %v15_v5  ;;  %v36_v20 = vmul.f32 %v27_v11, %v16_v8  ;;  %v37_v21 = vmul.f32 %v31_v12, %v17_v9 }
   0x9   :  { %v38_v22 = vmul.f32 %v27_v11, %v18_v10  ;;  %v39_v23 = vmul.f32 %v31_v12, %v19_v15  ;;  %v40_v24 = vmul.f32 %v27_v11, %v20_v16  ;;  %v41_v25 = vmul.f32 %v31_v12, %v21_v17 }
   0xa   :  { %v54_v26 = vadd.f32 %v47_v13, %v34_v18  ;;  %v55_v27 = vadd.f32 %v51_v14, %v35_v19  ;;  %v56_v28 = vadd.f32 %v47_v13, %v36_v20  ;;  %v57_v29 = vadd.f32 %v51_v14, %v37_v21 }
   0xb   :  { %v58_v30 = vadd.f32 %v47_v13, %v38_v22  ;;  %v59_v31 = vadd.f32 %v51_v14, %v39_v23  ;;  %v60_v32 = vadd.f32 %v47_v13, %v40_v24  ;;  %v61_v33 = vadd.f32 %v51_v14, %v41_v25 }
   0xc   :  { %v62_v34 = vmax.f32 %v54_v26, 0.0  ;;  %v63_v35 = vmax.f32 %v55_v27, 0.0  ;;  %v64_v36 = vmax.f32 %v56_v28, 0.0  ;;  %v65_v37 = vmax.f32 %v57_v29, 0.0 }
   0xd   :  { %v66_v38 = vmax.f32 %v58_v30, 0.0  ;;  %v67_v39 = vmax.f32 %v59_v31, 0.0  ;;  %v68_v40 = vmax.f32 %v60_v32, 0.0  ;;  %v69_v41 = vmax.f32 %v61_v33, 0.0 }
   0xe   :  { %v106_v42 = vpack.c.bf16 %v63_v35, %v62_v34  ;;  %v107_v43 = vpack.c.bf16 %v65_v37, %v64_v36 }
   0xf   :  { %v108_v44 = vpack.c.bf16 %v67_v39, %v66_v38  ;;  %v109_v45 = vpack.c.bf16 %v69_v41, %v68_v40 }
  0x10   :  { %94 = vst [vmem:[%s175_s3] sm:$0xff] %v106_v42  ;;  %95 = vst [vmem:[%s175_s3 + $0x8] sm:$0xff] %v107_v43 }
  0x11   :  { %96 = vst [vmem:[%s175_s3 + $0x10] sm:$0xff] %v108_v44  ;;  %97 = vst [vmem:[%s175_s3 + $0x18] sm:$0xff] %v109_v45 }

// kernel: basic_block_forward.4
= control target key start
LH: loop header
LB: loop body
LE: loop exit
PB: predicated region body
PF: predicated region fallthrough
CT: control target
= control target key end

     0   :  { %v1458_v0 = vmov 0   ;;  %vm438_vm0 = vcmask 130048   ;;  %vm1021_vm1 = vcmask 122880   ;;  %s2312_s1 = inlined_call_operand.vmem [shape: bf16[144,16], index: 1, kind: input, shape index: {}]   ;;  %s2313_s0 = inlined_call_operand.vmem [shape: bf16[512,144], index: 0, kind: input, shape index: {}]   ;;  %s2314_s2 = inlined_call_operand.vmem [shape: f32[512,16], index: 2, kind: output, shape index: {0}]   ;;  %s2315_s3 = inlined_call_operand.vmem [shape: f32[1,2,16], index: 3, kind: output, shape index: {1}]  }
   0x1   :  { %535 = vmatprep.subr.bf16.mxu0 %v1458_v0  ;;  %v1353_v1 = vld [vmem:[%s2312_s1] sm:$0xff]   ;;  %1334 = vmatprep.subr.bf16.mxu1 %v1458_v0  ;;  %v1354_v2 = vld [vmem:[%s2312_s1 + $0x8] sm:$0xff]   ;;  %v1355_v3 = vld [vmem:[%s2312_s1 + $0x10] sm:$0xff]  }
   0x2   :  { %536 = vmatpush1.bf16.msra.mxu0 %v1353_v1  ;;  %1343 = vmatpush1.bf16.msra.mxu1 %v1353_v1  ;;  %v1356_v4 = vld [vmem:[%s2312_s1 + $0x18] sm:$0xff]   ;;  %v1364_v5 = vld [vmem:[%s2313_s0 + $0x4] ss:$8 sps:$4 sm:$0xff]   ;;  %v1359_v9 = vld [vmem:[%s2312_s1 + $0x30] sm:$0xff]  }
   0x3   :  { %537 = vmatprep.subr.bf16.mxu0 %v1458_v0  ;;  %1335 = vmatprep.subr.bf16.mxu1 %v1458_v0  ;;  %v1357_v6 = vld [vmem:[%s2312_s1 + $0x20] sm:$0xff]   ;;  %v1358_v7 = vld [vmem:[%s2312_s1 + $0x28] sm:$0xff]   ;;  %v1360_v10 = vld [vmem:[%s2312_s1 + $0x38] sm:$0xff]  }
   0x4   :  { %1302 = vmatprep.mubr.msk.bf16.mxu0 %vm438_vm0, %v1364_v5  ;;  %v1388_v8 = vld [vmem:[%s2313_s0 + $0x104] ss:$8 sps:$4 sm:$0xff]   ;;  %v1362_v12 = vld [vmem:[%s2313_s0] ss:$8 sps:$4 sm:$0xff]   ;;  %v1365_v13 = vld [vmem:[%s2313_s0 + $0x14] ss:$8 sps:$4 sm:$0xff]  }
   0x5   :  { %1318 = vmatprep.mubr.msk.bf16.mxu1 %vm438_vm0, %v1388_v8  ;;  %v1361_v11 = vld [vmem:[%s2312_s1 + $0x40] sm:$0xff]   ;;  %v1392_v15 = vld [vmem:[%s2313_s0 + $0x114] ss:$8 sps:$4 sm:$0xff]   ;;  %v1367_v16 = vld [vmem:[%s2313_s0 + $0x10] ss:$8 sps:$4 sm:$0xff]  }
   0x6   :  { %538 = vmatpush1.bf16.msra.mxu0 %v1354_v2  ;;  %1344 = vmatpush1.bf16.msra.mxu1 %v1354_v2  ;;  %v1386_v14 = vld [vmem:[%s2313_s0 + $0x100] ss:$8 sps:$4 sm:$0xff]   ;;  %v1368_v17 = vld [vmem:[%s2313_s0 + $0x24] ss:$8 sps:$4 sm:$0xff]   ;;  %v1394_v18 = vld [vmem:[%s2313_s0 + $0x110] ss:$8 sps:$4 sm:$0xff]  }
   0x7   :  { %539 = vmatprep.subr.bf16.mxu0 %v1458_v0  ;;  %1336 = vmatprep.subr.bf16.mxu1 %v1458_v0  ;;  %v1398_v19 = vld [vmem:[%s2313_s0 + $0x124] ss:$8 sps:$4 sm:$0xff]   ;;  %v1370_v20 = vld [vmem:[%s2313_s0 + $0x20] ss:$8 sps:$4 sm:$0xff]   ;;  %v1371_v21 = vld [vmem:[%s2313_s0 + $0x34] ss:$8 sps:$4 sm:$0xff]  }
   0x8   :  { %v1400_v22 = vld [vmem:[%s2313_s0 + $0x120] ss:$8 sps:$4 sm:$0xff]   ;;  %v1404_v23 = vld [vmem:[%s2313_s0 + $0x134] ss:$8 sps:$4 sm:$0xff]   ;;  %v1373_v24 = vld [vmem:[%s2313_s0 + $0x30] ss:$8 sps:$4 sm:$0xff]  }
   0x9   :  { %v1406_v25 = vld [vmem:[%s2313_s0 + $0x130] ss:$8 sps:$4 sm:$0xff]   ;;  %v1374_v26 = vld [vmem:[%s2313_s0 + $0x44] ss:$8 sps:$4 sm:$0xff]   ;;  %v1376_v28 = vld [vmem:[%s2313_s0 + $0x40] ss:$8 sps:$4 sm:$0xff]  }
   0xa   :  { %540 = vmatpush1.bf16.msra.mxu0 %v1355_v3  ;;  %1345 = vmatpush1.bf16.msra.mxu1 %v1355_v3  ;;  %v1410_v27 = vld [vmem:[%s2313_s0 + $0x144] ss:$8 sps:$4 sm:$0xff]   ;;  %v1412_v29 = vld [vmem:[%s2313_s0 + $0x140] ss:$8 sps:$4 sm:$0xff]   ;;  %v1377_v30 = vld [vmem:[%s2313_s0 + $0x54] ss:$8 sps:$4 sm:$0xff]  }
   0xb   :  { %541 = vmatprep.subr.bf16.mxu0 %v1458_v0  ;;  %1337 = vmatprep.subr.bf16.mxu1 %v1458_v0  ;;  %v1416_v31 = vld [vmem:[%s2313_s0 + $0x154] ss:$8 sps:$4 sm:$0xff]   ;;  %v1379_v32 = vld [vmem:[%s2313_s0 + $0x50] ss:$8 sps:$4 sm:$0xff]   ;;  %v1380_v34 = vld [vmem:[%s2313_s0 + $0x64] ss:$8 sps:$4 sm:$0xff]  }
   0xc   :  { %v1418_v33 = vld [vmem:[%s2313_s0 + $0x150] ss:$8 sps:$4 sm:$0xff]   ;;  %v1422_v35 = vld [vmem:[%s2313_s0 + $0x164] ss:$8 sps:$4 sm:$0xff]   ;;  %v1382_v36 = vld [vmem:[%s2313_s0 + $0x60] ss:$8 sps:$4 sm:$0xff]  }
   0xd   :  { %v1424_v37 = vld [vmem:[%s2313_s0 + $0x160] ss:$8 sps:$4 sm:$0xff]   ;;  %v1383_v38 = vld [vmem:[%s2313_s0 + $0x74] ss:$8 sps:$4 sm:$0xff]   ;;  %v1385_v40 = vld [vmem:[%s2313_s0 + $0x70] ss:$8 sps:$4 sm:$0xff]  }
   0xe   :  { %542 = vmatpush1.bf16.msra.mxu0 %v1356_v4  ;;  %1346 = vmatpush1.bf16.msra.mxu1 %v1356_v4  ;;  %v1428_v39 = vld [vmem:[%s2313_s0 + $0x174] ss:$8 sps:$4 sm:$0xff]   ;;  %v1430_v41 = vld [vmem:[%s2313_s0 + $0x170] ss:$8 sps:$4 sm:$0xff]   ;;  %v1389_v42 = vld [vmem:[%s2313_s0 + $0x84] ss:$8 sps:$4 sm:$0xff]  }
   0xf   :  { %543 = vmatprep.subr.bf16.mxu0 %v1458_v0  ;;  %1338 = vmatprep.subr.bf16.mxu1 %v1458_v0  ;;  %v1434_v43 = vld [vmem:[%s2313_s0 + $0x184] ss:$8 sps:$4 sm:$0xff]   ;;  %v1391_v44 = vld [vmem:[%s2313_s0 + $0x80] ss:$8 sps:$4 sm:$0xff]   ;;  %v1395_v46 = vld [vmem:[%s2313_s0 + $0x94] ss:$8 sps:$4 sm:$0xff]  }
  0x10   :  { %v1436_v45 = vld [vmem:[%s2313_s0 + $0x180] ss:$8 sps:$4 sm:$0xff]   ;;  %v1437_v47 = vld [vmem:[%s2313_s0 + $0x194] ss:$8 sps:$4 sm:$0xff]   ;;  %v1397_v48 = vld [vmem:[%s2313_s0 + $0x90] ss:$8 sps:$4 sm:$0xff]  }
  0x11   :  { %v1439_v49 = vld [vmem:[%s2313_s0 + $0x190] ss:$8 sps:$4 sm:$0xff]   ;;  %v1401_v50 = vld [vmem:[%s2313_s0 + $0xa4] ss:$8 sps:$4 sm:$0xff]   ;;  %v1403_v52 = vld [vmem:[%s2313_s0 + $0xa0] ss:$8 sps:$4 sm:$0xff]  }
  0x12   :  { %544 = vmatpush1.bf16.msra.mxu0 %v1357_v6  ;;  %1347 = vmatpush1.bf16.msra.mxu1 %v1357_v6  ;;  %v1440_v51 = vld [vmem:[%s2313_s0 + $0x1a4] ss:$8 sps:$4 sm:$0xff]   ;;  %v1442_v53 = vld [vmem:[%s2313_s0 + $0x1a0] ss:$8 sps:$4 sm:$0xff]   ;;  %v1407_v54 = vld [vmem:[%s2313_s0 + $0xb4] ss:$8 sps:$4 sm:$0xff]  }
  0x13   :  { %545 = vmatprep.subr.bf16.mxu0 %v1458_v0  ;;  %1339 = vmatprep.subr.bf16.mxu1 %v1458_v0  ;;  %v1443_v55 = vld [vmem:[%s2313_s0 + $0x1b4] ss:$8 sps:$4 sm:$0xff]   ;;  %v1409_v56 = vld [vmem:[%s2313_s0 + $0xb0] ss:$8 sps:$4 sm:$0xff]   ;;  %v1413_v58 = vld [vmem:[%s2313_s0 + $0xc4] ss:$8 sps:$4 sm:$0xff]  }
  0x14   :  { %v1445_v57 = vld [vmem:[%s2313_s0 + $0x1b0] ss:$8 sps:$4 sm:$0xff]   ;;  %v1446_v59 = vld [vmem:[%s2313_s0 + $0x1c4] ss:$8 sps:$4 sm:$0xff]   ;;  %v1415_v60 = vld [vmem:[%s2313_s0 + $0xc0] ss:$8 sps:$4 sm:$0xff]  }
  0x15   :  { %v1448_v61 = vld [vmem:[%s2313_s0 + $0x1c0] ss:$8 sps:$4 sm:$0xff]   ;;  %v1419_v62 = vld [vmem:[%s2313_s0 + $0xd4] ss:$8 sps:$4 sm:$0xff]   ;;  %v1451_v1 = vld [vmem:[%s2313_s0 + $0x1d0] ss:$8 sps:$4 sm:$0xff]  }
  0x16   :  { %546 = vmatpush1.bf16.msra.mxu0 %v1358_v7  ;;  %1348 = vmatpush1.bf16.msra.mxu1 %v1358_v7  ;;  %v1449_v63 = vld [vmem:[%s2313_s0 + $0x1d4] ss:$8 sps:$4 sm:$0xff]   ;;  %v1425_v2 = vld [vmem:[%s2313_s0 + $0xe4] ss:$8 sps:$4 sm:$0xff]   ;;  %v1427_v4 = vld [vmem:[%s2313_s0 + $0xe0] ss:$8 sps:$4 sm:$0xff]  }
  0x17   :  { %547 = vmatprep.subr.bf16.mxu0 %v1458_v0  ;;  %1340 = vmatprep.subr.bf16.mxu1 %v1458_v0  ;;  %v1452_v3 = vld [vmem:[%s2313_s0 + $0x1e4] ss:$8 sps:$4 sm:$0xff]   ;;  %v1454_v5 = vld [vmem:[%s2313_s0 + $0x1e0] ss:$8 sps:$4 sm:$0xff]   ;;  %v1431_v6 = vld [vmem:[%s2313_s0 + $0xf4] ss:$8 sps:$4 sm:$0xff]  }
  0x18   :  { %v1455_v7 = vld [vmem:[%s2313_s0 + $0x1f4] ss:$8 sps:$4 sm:$0xff]   ;;  %v1433_v8 = vld [vmem:[%s2313_s0 + $0xf0] ss:$8 sps:$4 sm:$0xff]  }
  0x1a   :  { %548 = vmatpush1.bf16.msra.mxu0 %v1359_v9  ;;  %1349 = vmatpush1.bf16.msra.mxu1 %v1359_v9  ;;  %v1457_v9 = vld [vmem:[%s2313_s0 + $0x1f0] ss:$8 sps:$4 sm:$0xff]  }
  0x1b   :  { %549 = vmatprep.subr.bf16.mxu0 %v1458_v0  ;;  %1341 = vmatprep.subr.bf16.mxu1 %v1458_v0 }
  0x1e   :  { %550 = vmatpush1.bf16.msra.mxu0 %v1360_v10  ;;  %1350 = vmatpush1.bf16.msra.mxu1 %v1360_v10 }
  0x1f   :  { %551 = vmatprep.subr.bf16.mxu0 %v1458_v0  ;;  %1342 = vmatprep.subr.bf16.mxu1 %v1458_v0  ;;  %v1421_v0 = vld [vmem:[%s2313_s0 + $0xd0] ss:$8 sps:$4 sm:$0xff]  }
  0x22   :  { %552 = vmatpush1.bf16.msra.mxu0 %v1361_v11  ;;  %1351 = vmatpush1.bf16.msra.mxu1 %v1361_v11 }
  0x25   :  { %568 = vmatmul.mubr.bf16.vlgmr.msra.gmra.mrb[0].mxu0 %v1362_v12  ;;  %696 = vmatmul.mubr.bf16.vlgmr.msra.gmra.mrb[0].mxu1 %v1386_v14 }
  0x26   :  { %1303 = vmatprep.mubr.msk.bf16.mxu0 %vm438_vm0, %v1365_v13  ;;  %1319 = vmatprep.mubr.msk.bf16.mxu1 %vm438_vm0, %v1392_v15 }
  0x2d   :  { %576 = vmatmul.mubr.bf16.gmra.mrb[4].mxu0 %v1367_v16  ;;  %704 = vmatmul.mubr.bf16.gmra.mrb[4].mxu1 %v1394_v18 }
  0x2e   :  { %1304 = vmatprep.mubr.msk.bf16.mxu0 %vm438_vm0, %v1368_v17  ;;  %1320 = vmatprep.mubr.msk.bf16.mxu1 %vm438_vm0, %v1398_v19 }
  0x35   :  { %584 = vmatmul.mubr.bf16.gmra.mrb[8].mxu0 %v1370_v20  ;;  %712 = vmatmul.mubr.bf16.gmra.mrb[8].mxu1 %v1400_v22 }
  0x36   :  { %1305 = vmatprep.mubr.msk.bf16.mxu0 %vm438_vm0, %v1371_v21  ;;  %1321 = vmatprep.mubr.msk.bf16.mxu1 %vm438_vm0, %v1404_v23 }
  0x3d   :  { %592 = vmatmul.mubr.bf16.gmra.mrb[12].mxu0 %v1373_v24  ;;  %720 = vmatmul.mubr.bf16.gmra.mrb[12].mxu1 %v1406_v25 }
  0x3e   :  { %1306 = vmatprep.mubr.msk.bf16.mxu0 %vm438_vm0, %v1374_v26  ;;  %1322 = vmatprep.mubr.msk.bf16.mxu1 %vm438_vm0, %v1410_v27 }
  0x45   :  { %600 = vmatmul.mubr.bf16.gmra.mrb[16].mxu0 %v1376_v28  ;;  %728 = vmatmul.mubr.bf16.gmra.mrb[16].mxu1 %v1412_v29 }
  0x46   :  { %1307 = vmatprep.mubr.msk.bf16.mxu0 %vm438_vm0, %v1377_v30  ;;  %1323 = vmatprep.mubr.msk.bf16.mxu1 %vm438_vm0, %v1416_v31 }
  0x4d   :  { %608 = vmatmul.mubr.bf16.gmra.mrb[20].mxu0 %v1379_v32  ;;  %736 = vmatmul.mubr.bf16.gmra.mrb[20].mxu1 %v1418_v33 }
  0x4e   :  { %1308 = vmatprep.mubr.msk.bf16.mxu0 %vm438_vm0, %v1380_v34  ;;  %1324 = vmatprep.mubr.msk.bf16.mxu1 %vm438_vm0, %v1422_v35 }
  0x55   :  { %616 = vmatmul.mubr.bf16.gmra.mrb[24].mxu0 %v1382_v36  ;;  %744 = vmatmul.mubr.bf16.gmra.mrb[24].mxu1 %v1424_v37 }
  0x56   :  { %1309 = vmatprep.mubr.msk.bf16.mxu0 %vm438_vm0, %v1383_v38  ;;  %1325 = vmatprep.mubr.msk.bf16.mxu1 %vm438_vm0, %v1428_v39 }
  0x5d   :  { %624 = vmatmul.mubr.bf16.gmra.mrb[28].mxu0 %v1385_v40  ;;  %752 = vmatmul.mubr.bf16.gmra.mrb[28].mxu1 %v1430_v41 }
  0x5e   :  { %1310 = vmatprep.mubr.msk.bf16.mxu0 %vm438_vm0, %v1389_v42  ;;  %1326 = vmatprep.mubr.msk.bf16.mxu1 %vm438_vm0, %v1434_v43 }
  0x65   :  { %632 = vmatmul.mubr.bf16.gmra.mrb[32].mxu0 %v1391_v44  ;;  %760 = vmatmul.mubr.bf16.gmra.mrb[32].mxu1 %v1436_v45 }
  0x66   :  { %1311 = vmatprep.mubr.msk.bf16.mxu0 %vm438_vm0, %v1395_v46  ;;  %1327 = vmatprep.mubr.msk.bf16.mxu1 %vm438_vm0, %v1437_v47 }
  0x6d   :  { %640 = vmatmul.mubr.bf16.gmra.mrb[36].mxu0 %v1397_v48  ;;  %768 = vmatmul.mubr.bf16.gmra.mrb[36].mxu1 %v1439_v49 }
  0x6e   :  { %1312 = vmatprep.mubr.msk.bf16.mxu0 %vm438_vm0, %v1401_v50  ;;  %1328 = vmatprep.mubr.msk.bf16.mxu1 %vm438_vm0, %v1440_v51 }
  0x75   :  { %648 = vmatmul.mubr.bf16.gmra.mrb[40].mxu0 %v1403_v52  ;;  %776 = vmatmul.mubr.bf16.gmra.mrb[40].mxu1 %v1442_v53 }
  0x76   :  { %1313 = vmatprep.mubr.msk.bf16.mxu0 %vm438_vm0, %v1407_v54  ;;  %1329 = vmatprep.mubr.msk.bf16.mxu1 %vm438_vm0, %v1443_v55 }
  0x7d   :  { %656 = vmatmul.mubr.bf16.gmra.mrb[44].mxu0 %v1409_v56  ;;  %784 = vmatmul.mubr.bf16.gmra.mrb[44].mxu1 %v1445_v57 }
  0x7e   :  { %1314 = vmatprep.mubr.msk.bf16.mxu0 %vm438_vm0, %v1413_v58  ;;  %1330 = vmatprep.mubr.msk.bf16.mxu1 %vm438_vm0, %v1446_v59 }
  0x85   :  { %664 = vmatmul.mubr.bf16.gmra.mrb[48].mxu0 %v1415_v60  ;;  %792 = vmatmul.mubr.bf16.gmra.mrb[48].mxu1 %v1448_v61 }
  0x86   :  { %1315 = vmatprep.mubr.msk.bf16.mxu0 %vm438_vm0, %v1419_v62  ;;  %1331 = vmatprep.mubr.msk.bf16.mxu1 %vm438_vm0, %v1449_v63 }
  0x8d   :  { %672 = vmatmul.mubr.bf16.gmra.mrb[52].mxu0 %v1421_v0  ;;  %800 = vmatmul.mubr.bf16.gmra.mrb[52].mxu1 %v1451_v1 }
  0x8e   :  { %1316 = vmatprep.mubr.msk.bf16.mxu0 %vm438_vm0, %v1425_v2  ;;  %1332 = vmatprep.mubr.msk.bf16.mxu1 %vm438_vm0, %v1452_v3 }
  0x95   :  { %680 = vmatmul.mubr.bf16.gmra.mrb[56].mxu0 %v1427_v4  ;;  %808 = vmatmul.mubr.bf16.gmra.mrb[56].mxu1 %v1454_v5 }
  0x96   :  { %1317 = vmatprep.mubr.msk.bf16.mxu0 %vm438_vm0, %v1431_v6  ;;  %1333 = vmatprep.mubr.msk.bf16.mxu1 %vm438_vm0, %v1455_v7 }
  0x9d   :  { %688 = vmatmul.mubr.bf16.gmra.mrb[60].mxu0 %v1433_v8  ;;  %816 = vmatmul.mubr.bf16.gmra.mrb[60].mxu1 %v1457_v9 }
  0xf8   :  { %v569_v10 = vpop.f32.mrb[0].mxu0  ;;  %v1730_v11 = vpop.f32.mrb[0].mxu1 }
  0xf9   :  { %824 = vst.msk [vmem:[%s2314_s2] sm:$0xff] %vm438_vm0, %v569_v10  ;;  %v1023_v12 = vmul.f32 %v569_v10, %v569_v10  ;;  %v571_v13 = vpop.f32.mrb[1].mxu0  ;;  %856 = vst.msk [vmem:[%s2314_s2 + $0x100] sm:$0xff] %vm438_vm0, %v1730_v11  ;;  %v699_v14 = vpop.f32.mrb[1].mxu1  ;;  %v888_v17 = vsel %vm438_vm0, %v569_v10, 0.0 }
  0xfa   :  { %v572_v15 = vpop.f32.mrb[2].mxu0  ;;  %v1741_v16 = vpop.f32.mrb[2].mxu1 }
  0xfb   :  { %825 = vst.msk [vmem:[%s2314_s2 + $0x8] sm:$0xff] %vm438_vm0, %v572_v15  ;;  %v889_v18 = vsel %vm438_vm0, %v572_v15, 0.0  ;;  %v1024_v19 = vmul.f32 %v572_v15, %v572_v15  ;;  %v574_v20 = vpop.f32.mrb[3].mxu0  ;;  %857 = vst.msk [vmem:[%s2314_s2 + $0x108] sm:$0xff] %vm438_vm0, %v1741_v16  ;;  %v702_v21 = vpop.f32.mrb[3].mxu1  ;;  %v1087_v23 = vsel %vm438_vm0, %v1023_v12, 0.0 }
  0xfc   :  { %v890_v22 = vadd.f32 %v889_v18, %v888_v17 }
  0xfd   :  { %v1088_v24 = vsel %vm438_vm0, %v1024_v19, 0.0 }
  0xfe   :  { %v1089_v25 = vadd.f32 %v1088_v24, %v1087_v23 }
 0x100   :  { %v577_v26 = vpop.f32.mrb[4].mxu0  ;;  %v1756_v27 = vpop.f32.mrb[4].mxu1 }
 0x101   :  { %826 = vst.msk [vmem:[%s2314_s2 + $0x10] sm:$0xff] %vm438_vm0, %v577_v26  ;;  %v891_v28 = vsel %vm438_vm0, %v577_v26, 0.0  ;;  %v1025_v29 = vmul.f32 %v577_v26, %v577_v26  ;;  %v579_v30 = vpop.f32.mrb[5].mxu0  ;;  %858 = vst.msk [vmem:[%s2314_s2 + $0x110] sm:$0xff] %vm438_vm0, %v1756_v27  ;;  %v707_v31 = vpop.f32.mrb[5].mxu1 }
 0x102   :  { %v892_v32 = vadd.f32 %v891_v28, %v890_v22  ;;  %v580_v33 = vpop.f32.mrb[6].mxu0  ;;  %v1768_v34 = vpop.f32.mrb[6].mxu1 }
 0x103   :  { %v1090_v35 = vsel %vm438_vm0, %v1025_v29, 0.0  ;;  %827 = vst.msk [vmem:[%s2314_s2 + $0x18] sm:$0xff] %vm438_vm0, %v580_v33  ;;  %v893_v36 = vsel %vm438_vm0, %v580_v33, 0.0  ;;  %v1026_v37 = vmul.f32 %v580_v33, %v580_v33  ;;  %v582_v38 = vpop.f32.mrb[7].mxu0  ;;  %859 = vst.msk [vmem:[%s2314_s2 + $0x118] sm:$0xff] %vm438_vm0, %v1768_v34  ;;  %v710_v39 = vpop.f32.mrb[7].mxu1 }
 0x104   :  { %v1091_v40 = vadd.f32 %v1090_v35, %v1089_v25  ;;  %v894_v41 = vadd.f32 %v893_v36, %v892_v32 }
 0x105   :  { %v1092_v42 = vsel %vm438_vm0, %v1026_v37, 0.0 }
 0x106   :  { %v1093_v43 = vadd.f32 %v1092_v42, %v1091_v40 }
 0x108   :  { %v585_v44 = vpop.f32.mrb[8].mxu0  ;;  %v1782_v45 = vpop.f32.mrb[8].mxu1 }
 0x109   :  { %828 = vst.msk [vmem:[%s2314_s2 + $0x20] sm:$0xff] %vm438_vm0, %v585_v44  ;;  %v895_v46 = vsel %vm438_vm0, %v585_v44, 0.0  ;;  %v1027_v47 = vmul.f32 %v585_v44, %v585_v44  ;;  %v587_v48 = vpop.f32.mrb[9].mxu0  ;;  %860 = vst.msk [vmem:[%s2314_s2 + $0x120] sm:$0xff] %vm438_vm0, %v1782_v45  ;;  %v715_v49 = vpop.f32.mrb[9].mxu1 }
 0x10a   :  { %v896_v50 = vadd.f32 %v895_v46, %v894_v41  ;;  %v588_v51 = vpop.f32.mrb[10].mxu0  ;;  %v1794_v52 = vpop.f32.mrb[10].mxu1 }
 0x10b   :  { %v1094_v53 = vsel %vm438_vm0, %v1027_v47, 0.0  ;;  %829 = vst.msk [vmem:[%s2314_s2 + $0x28] sm:$0xff] %vm438_vm0, %v588_v51  ;;  %v897_v54 = vsel %vm438_vm0, %v588_v51, 0.0  ;;  %v1028_v55 = vmul.f32 %v588_v51, %v588_v51  ;;  %v590_v56 = vpop.f32.mrb[11].mxu0  ;;  %861 = vst.msk [vmem:[%s2314_s2 + $0x128] sm:$0xff] %vm438_vm0, %v1794_v52  ;;  %v718_v57 = vpop.f32.mrb[11].mxu1 }
 0x10c   :  { %v1095_v58 = vadd.f32 %v1094_v53, %v1093_v43  ;;  %v898_v59 = vadd.f32 %v897_v54, %v896_v50 }
 0x10d   :  { %v1096_v60 = vsel %vm438_vm0, %v1028_v55, 0.0 }
 0x10e   :  { %v1097_v61 = vadd.f32 %v1096_v60, %v1095_v58 }
 0x110   :  { %v593_v62 = vpop.f32.mrb[12].mxu0  ;;  %v1808_v63 = vpop.f32.mrb[12].mxu1 }
 0x111   :  { %830 = vst.msk [vmem:[%s2314_s2 + $0x30] sm:$0xff] %vm438_vm0, %v593_v62  ;;  %v899_v0 = vsel %vm438_vm0, %v593_v62, 0.0  ;;  %v1029_v1 = vmul.f32 %v593_v62, %v593_v62  ;;  %v595_v2 = vpop.f32.mrb[13].mxu0  ;;  %862 = vst.msk [vmem:[%s2314_s2 + $0x130] sm:$0xff] %vm438_vm0, %v1808_v63  ;;  %v723_v3 = vpop.f32.mrb[13].mxu1 }
 0x112   :  { %v900_v4 = vadd.f32 %v899_v0, %v898_v59  ;;  %v596_v5 = vpop.f32.mrb[14].mxu0  ;;  %v1820_v6 = vpop.f32.mrb[14].mxu1 }
 0x113   :  { %v1098_v7 = vsel %vm438_vm0, %v1029_v1, 0.0  ;;  %831 = vst.msk [vmem:[%s2314_s2 + $0x38] sm:$0xff] %vm438_vm0, %v596_v5  ;;  %v901_v8 = vsel %vm438_vm0, %v596_v5, 0.0  ;;  %v1030_v9 = vmul.f32 %v596_v5, %v596_v5  ;;  %v598_v10 = vpop.f32.mrb[15].mxu0  ;;  %863 = vst.msk [vmem:[%s2314_s2 + $0x138] sm:$0xff] %vm438_vm0, %v1820_v6  ;;  %v726_v12 = vpop.f32.mrb[15].mxu1 }
 0x114   :  { %v1099_v13 = vadd.f32 %v1098_v7, %v1097_v61  ;;  %v902_v14 = vadd.f32 %v901_v8, %v900_v4 }
 0x115   :  { %v1100_v15 = vsel %vm438_vm0, %v1030_v9, 0.0 }
 0x116   :  { %v1101_v17 = vadd.f32 %v1100_v15, %v1099_v13 }
 0x118   :  { %v601_v18 = vpop.f32.mrb[16].mxu0  ;;  %v1834_v19 = vpop.f32.mrb[16].mxu1 }
 0x119   :  { %832 = vst.msk [vmem:[%s2314_s2 + $0x40] sm:$0xff] %vm438_vm0, %v601_v18  ;;  %v903_v20 = vsel %vm438_vm0, %v601_v18, 0.0  ;;  %v1031_v21 = vmul.f32 %v601_v18, %v601_v18  ;;  %v603_v22 = vpop.f32.mrb[17].mxu0  ;;  %864 = vst.msk [vmem:[%s2314_s2 + $0x140] sm:$0xff] %vm438_vm0, %v1834_v19  ;;  %v731_v23 = vpop.f32.mrb[17].mxu1 }
 0x11a   :  { %v904_v24 = vadd.f32 %v903_v20, %v902_v14  ;;  %v604_v25 = vpop.f32.mrb[18].mxu0  ;;  %v1846_v26 = vpop.f32.mrb[18].mxu1 }
 0x11b   :  { %v1102_v28 = vsel %vm438_vm0, %v1031_v21, 0.0  ;;  %833 = vst.msk [vmem:[%s2314_s2 + $0x48] sm:$0xff] %vm438_vm0, %v604_v25  ;;  %v905_v29 = vsel %vm438_vm0, %v604_v25, 0.0  ;;  %v1032_v30 = vmul.f32 %v604_v25, %v604_v25  ;;  %v606_v31 = vpop.f32.mrb[19].mxu0  ;;  %865 = vst.msk [vmem:[%s2314_s2 + $0x148] sm:$0xff] %vm438_vm0, %v1846_v26  ;;  %v734_v32 = vpop.f32.mrb[19].mxu1 }
 0x11c   :  { %v1103_v33 = vadd.f32 %v1102_v28, %v1101_v17  ;;  %v906_v35 = vadd.f32 %v905_v29, %v904_v24 }
 0x11d   :  { %v1104_v36 = vsel %vm438_vm0, %v1032_v30, 0.0 }
 0x11e   :  { %v1105_v37 = vadd.f32 %v1104_v36, %v1103_v33 }
 0x120   :  { %v609_v38 = vpop.f32.mrb[20].mxu0  ;;  %v1860_v39 = vpop.f32.mrb[20].mxu1 }
 0x121   :  { %834 = vst.msk [vmem:[%s2314_s2 + $0x50] sm:$0xff] %vm438_vm0, %v609_v38  ;;  %v907_v40 = vsel %vm438_vm0, %v609_v38, 0.0  ;;  %v1033_v41 = vmul.f32 %v609_v38, %v609_v38  ;;  %v611_v42 = vpop.f32.mrb[21].mxu0  ;;  %866 = vst.msk [vmem:[%s2314_s2 + $0x150] sm:$0xff] %vm438_vm0, %v1860_v39  ;;  %v739_v43 = vpop.f32.mrb[21].mxu1 }
 0x122   :  { %v908_v44 = vadd.f32 %v907_v40, %v906_v35  ;;  %v612_v46 = vpop.f32.mrb[22].mxu0  ;;  %v1872_v47 = vpop.f32.mrb[22].mxu1 }
 0x123   :  { %v1106_v48 = vsel %vm438_vm0, %v1033_v41, 0.0  ;;  %835 = vst.msk [vmem:[%s2314_s2 + $0x58] sm:$0xff] %vm438_vm0, %v612_v46  ;;  %v909_v49 = vsel %vm438_vm0, %v612_v46, 0.0  ;;  %v1034_v50 = vmul.f32 %v612_v46, %v612_v46  ;;  %v614_v51 = vpop.f32.mrb[23].mxu0  ;;  %867 = vst.msk [vmem:[%s2314_s2 + $0x158] sm:$0xff] %vm438_vm0, %v1872_v47  ;;  %v742_v53 = vpop.f32.mrb[23].mxu1 }
 0x124   :  { %v1107_v54 = vadd.f32 %v1106_v48, %v1105_v37  ;;  %v910_v55 = vadd.f32 %v909_v49, %v908_v44 }
 0x125   :  { %v1108_v56 = vsel %vm438_vm0, %v1034_v50, 0.0 }
 0x126   :  { %v1109_v57 = vadd.f32 %v1108_v56, %v1107_v54 }
 0x128   :  { %v617_v58 = vpop.f32.mrb[24].mxu0  ;;  %v1886_v59 = vpop.f32.mrb[24].mxu1 }
 0x129   :  { %836 = vst.msk [vmem:[%s2314_s2 + $0x60] sm:$0xff] %vm438_vm0, %v617_v58  ;;  %v911_v60 = vsel %vm438_vm0, %v617_v58, 0.0  ;;  %v1035_v61 = vmul.f32 %v617_v58, %v617_v58  ;;  %v619_v62 = vpop.f32.mrb[25].mxu0  ;;  %868 = vst.msk [vmem:[%s2314_s2 + $0x160] sm:$0xff] %vm438_vm0, %v1886_v59  ;;  %v747_v0 = vpop.f32.mrb[25].mxu1 }
 0x12a   :  { %v912_v1 = vadd.f32 %v911_v60, %v910_v55  ;;  %v620_v2 = vpop.f32.mrb[26].mxu0  ;;  %v1898_v3 = vpop.f32.mrb[26].mxu1 }
 0x12b   :  { %v1110_v4 = vsel %vm438_vm0, %v1035_v61, 0.0  ;;  %837 = vst.msk [vmem:[%s2314_s2 + $0x68] sm:$0xff] %vm438_vm0, %v620_v2  ;;  %v913_v5 = vsel %vm438_vm0, %v620_v2, 0.0  ;;  %v1036_v7 = vmul.f32 %v620_v2, %v620_v2  ;;  %v622_v8 = vpop.f32.mrb[27].mxu0  ;;  %869 = vst.msk [vmem:[%s2314_s2 + $0x168] sm:$0xff] %vm438_vm0, %v1898_v3  ;;  %v750_v9 = vpop.f32.mrb[27].mxu1 }
 0x12c   :  { %v1111_v10 = vadd.f32 %v1110_v4, %v1109_v57  ;;  %v914_v12 = vadd.f32 %v913_v5, %v912_v1 }
 0x12d   :  { %v1112_v13 = vsel %vm438_vm0, %v1036_v7, 0.0 }
 0x12e   :  { %v1113_v14 = vadd.f32 %v1112_v13, %v1111_v10 }
 0x130   :  { %v625_v15 = vpop.f32.mrb[28].mxu0  ;;  %v1912_v17 = vpop.f32.mrb[28].mxu1 }
 0x131   :  { %838 = vst.msk [vmem:[%s2314_s2 + $0x70] sm:$0xff] %vm438_vm0, %v625_v15  ;;  %v915_v18 = vsel %vm438_vm0, %v625_v15, 0.0  ;;  %v1037_v20 = vmul.f32 %v625_v15, %v625_v15  ;;  %v627_v21 = vpop.f32.mrb[29].mxu0  ;;  %870 = vst.msk [vmem:[%s2314_s2 + $0x170] sm:$0xff] %vm438_vm0, %v1912_v17  ;;  %v755_v22 = vpop.f32.mrb[29].mxu1 }
 0x132   :  { %v916_v23 = vadd.f32 %v915_v18, %v914_v12  ;;  %v628_v24 = vpop.f32.mrb[30].mxu0  ;;  %v1924_v25 = vpop.f32.mrb[30].mxu1 }
 0x133   :  { %v1114_v28 = vsel %vm438_vm0, %v1037_v20, 0.0  ;;  %839 = vst.msk [vmem:[%s2314_s2 + $0x78] sm:$0xff] %vm438_vm0, %v628_v24  ;;  %v917_v29 = vsel %vm438_vm0, %v628_v24, 0.0  ;;  %v1038_v30 = vmul.f32 %v628_v24, %v628_v24  ;;  %v630_v31 = vpop.f32.mrb[31].mxu0  ;;  %871 = vst.msk [vmem:[%s2314_s2 + $0x178] sm:$0xff] %vm438_vm0, %v1924_v25  ;;  %v758_v32 = vpop.f32.mrb[31].mxu1 }
 0x134   :  { %v1115_v33 = vadd.f32 %v1114_v28, %v1113_v14  ;;  %v918_v35 = vadd.f32 %v917_v29, %v916_v23 }
 0x135   :  { %v1116_v36 = vsel %vm438_vm0, %v1038_v30, 0.0 }
 0x136   :  { %v1117_v37 = vadd.f32 %v1116_v36, %v1115_v33 }
 0x138   :  { %v633_v38 = vpop.f32.mrb[32].mxu0  ;;  %v1938_v40 = vpop.f32.mrb[32].mxu1 }
 0x139   :  { %840 = vst.msk [vmem:[%s2314_s2 + $0x80] sm:$0xff] %vm438_vm0, %v633_v38  ;;  %v919_v41 = vsel %vm438_vm0, %v633_v38, 0.0  ;;  %v1039_v42 = vmul.f32 %v633_v38, %v633_v38  ;;  %v635_v43 = vpop.f32.mrb[33].mxu0  ;;  %872 = vst.msk [vmem:[%s2314_s2 + $0x180] sm:$0xff] %vm438_vm0, %v1938_v40  ;;  %v763_v44 = vpop.f32.mrb[33].mxu1 }
 0x13a   :  { %v920_v46 = vadd.f32 %v919_v41, %v918_v35  ;;  %v636_v48 = vpop.f32.mrb[34].mxu0  ;;  %v1950_v49 = vpop.f32.mrb[34].mxu1 }
 0x13b   :  { %v1118_v50 = vsel %vm438_vm0, %v1039_v42, 0.0  ;;  %841 = vst.msk [vmem:[%s2314_s2 + $0x88] sm:$0xff] %vm438_vm0, %v636_v48  ;;  %v921_v51 = vsel %vm438_vm0, %v636_v48, 0.0  ;;  %v1040_v53 = vmul.f32 %v636_v48, %v636_v48  ;;  %v638_v54 = vpop.f32.mrb[35].mxu0  ;;  %873 = vst.msk [vmem:[%s2314_s2 + $0x188] sm:$0xff] %vm438_vm0, %v1950_v49  ;;  %v766_v55 = vpop.f32.mrb[35].mxu1 }
 0x13c   :  { %v1119_v56 = vadd.f32 %v1118_v50, %v1117_v37  ;;  %v922_v57 = vadd.f32 %v921_v51, %v920_v46 }
 0x13d   :  { %v1120_v58 = vsel %vm438_vm0, %v1040_v53, 0.0 }
 0x13e   :  { %v1121_v60 = vadd.f32 %v1120_v58, %v1119_v56 }
 0x140   :  { %v641_v61 = vpop.f32.mrb[36].mxu0  ;;  %v1964_v62 = vpop.f32.mrb[36].mxu1 }
 0x141   :  { %842 = vst.msk [vmem:[%s2314_s2 + $0x90] sm:$0xff] %vm438_vm0, %v641_v61  ;;  %v923_v0 = vsel %vm438_vm0, %v641_v61, 0.0  ;;  %v1041_v1 = vmul.f32 %v641_v61, %v641_v61  ;;  %v643_v2 = vpop.f32.mrb[37].mxu0  ;;  %874 = vst.msk [vmem:[%s2314_s2 + $0x190] sm:$0xff] %vm438_vm0, %v1964_v62  ;;  %v771_v4 = vpop.f32.mrb[37].mxu1 }
 0x142   :  { %v924_v5 = vadd.f32 %v923_v0, %v922_v57  ;;  %v644_v7 = vpop.f32.mrb[38].mxu0  ;;  %v1976_v8 = vpop.f32.mrb[38].mxu1 }
 0x143   :  { %v1122_v9 = vsel %vm438_vm0, %v1041_v1, 0.0  ;;  %843 = vst.msk [vmem:[%s2314_s2 + $0x98] sm:$0xff] %vm438_vm0, %v644_v7  ;;  %v925_v10 = vsel %vm438_vm0, %v644_v7, 0.0  ;;  %v1042_v12 = vmul.f32 %v644_v7, %v644_v7  ;;  %v646_v13 = vpop.f32.mrb[39].mxu0  ;;  %875 = vst.msk [vmem:[%s2314_s2 + $0x198] sm:$0xff] %vm438_vm0, %v1976_v8  ;;  %v774_v14 = vpop.f32.mrb[39].mxu1 }
 0x144   :  { %v1123_v15 = vadd.f32 %v1122_v9, %v1121_v60  ;;  %v926_v18 = vadd.f32 %v925_v10, %v924_v5 }
 0x145   :  { %v1124_v20 = vsel %vm438_vm0, %v1042_v12, 0.0 }
 0x146   :  { %v1125_v21 = vadd.f32 %v1124_v20, %v1123_v15 }
 0x148   :  { %v649_v22 = vpop.f32.mrb[40].mxu0  ;;  %v1990_v23 = vpop.f32.mrb[40].mxu1 }
 0x149   :  { %844 = vst.msk [vmem:[%s2314_s2 + $0xa0] sm:$0xff] %vm438_vm0, %v649_v22  ;;  %v927_v24 = vsel %vm438_vm0, %v649_v22, 0.0  ;;  %v1043_v28 = vmul.f32 %v649_v22, %v649_v22  ;;  %v651_v29 = vpop.f32.mrb[41].mxu0  ;;  %876 = vst.msk [vmem:[%s2314_s2 + $0x1a0] sm:$0xff] %vm438_vm0, %v1990_v23  ;;  %v779_v30 = vpop.f32.mrb[41].mxu1 }
 0x14a   :  { %v928_v31 = vadd.f32 %v927_v24, %v926_v18  ;;  %v652_v32 = vpop.f32.mrb[42].mxu0  ;;  %v2002_v33 = vpop.f32.mrb[42].mxu1 }
 0x14b   :  { %v1126_v35 = vsel %vm438_vm0, %v1043_v28, 0.0  ;;  %845 = vst.msk [vmem:[%s2314_s2 + $0xa8] sm:$0xff] %vm438_vm0, %v652_v32  ;;  %v929_v36 = vsel %vm438_vm0, %v652_v32, 0.0  ;;  %v1044_v37 = vmul.f32 %v652_v32, %v652_v32  ;;  %v654_v38 = vpop.f32.mrb[43].mxu0  ;;  %877 = vst.msk [vmem:[%s2314_s2 + $0x1a8] sm:$0xff] %vm438_vm0, %v2002_v33  ;;  %v782_v41 = vpop.f32.mrb[43].mxu1 }
 0x14c   :  { %v1127_v42 = vadd.f32 %v1126_v35, %v1125_v21  ;;  %v930_v43 = vadd.f32 %v929_v36, %v928_v31 }
 0x14d   :  { %v1128_v44 = vsel %vm438_vm0, %v1044_v37, 0.0 }
 0x14e   :  { %v1129_v46 = vadd.f32 %v1128_v44, %v1127_v42 }
 0x150   :  { %v657_v48 = vpop.f32.mrb[44].mxu0  ;;  %v2016_v50 = vpop.f32.mrb[44].mxu1 }
 0x151   :  { %846 = vst.msk [vmem:[%s2314_s2 + $0xb0] sm:$0xff] %vm438_vm0, %v657_v48  ;;  %v931_v51 = vsel %vm438_vm0, %v657_v48, 0.0  ;;  %v1045_v53 = vmul.f32 %v657_v48, %v657_v48  ;;  %v659_v54 = vpop.f32.mrb[45].mxu0  ;;  %878 = vst.msk [vmem:[%s2314_s2 + $0x1b0] sm:$0xff] %vm438_vm0, %v2016_v50  ;;  %v787_v55 = vpop.f32.mrb[45].mxu1 }
 0x152   :  { %v932_v56 = vadd.f32 %v931_v51, %v930_v43  ;;  %v660_v57 = vpop.f32.mrb[46].mxu0  ;;  %v2028_v58 = vpop.f32.mrb[46].mxu1 }
 0x153   :  { %v1130_v60 = vsel %vm438_vm0, %v1045_v53, 0.0  ;;  %847 = vst.msk [vmem:[%s2314_s2 + $0xb8] sm:$0xff] %vm438_vm0, %v660_v57  ;;  %v933_v61 = vsel %vm438_vm0, %v660_v57, 0.0  ;;  %v1046_v0 = vmul.f32 %v660_v57, %v660_v57  ;;  %v662_v1 = vpop.f32.mrb[47].mxu0  ;;  %879 = vst.msk [vmem:[%s2314_s2 + $0x1b8] sm:$0xff] %vm438_vm0, %v2028_v58  ;;  %v790_v2 = vpop.f32.mrb[47].mxu1 }
 0x154   :  { %v1131_v4 = vadd.f32 %v1130_v60, %v1129_v46  ;;  %v934_v5 = vadd.f32 %v933_v61, %v932_v56 }
 0x155   :  { %v1132_v7 = vsel %vm438_vm0, %v1046_v0, 0.0 }
 0x156   :  { %v1133_v9 = vadd.f32 %v1132_v7, %v1131_v4 }
 0x158   :  { %v665_v10 = vpop.f32.mrb[48].mxu0  ;;  %v2042_v12 = vpop.f32.mrb[48].mxu1 }
 0x159   :  { %848 = vst.msk [vmem:[%s2314_s2 + $0xc0] sm:$0xff] %vm438_vm0, %v665_v10  ;;  %v935_v13 = vsel %vm438_vm0, %v665_v10, 0.0  ;;  %v1047_v14 = vmul.f32 %v665_v10, %v665_v10  ;;  %v667_v15 = vpop.f32.mrb[49].mxu0  ;;  %880 = vst.msk [vmem:[%s2314_s2 + $0x1c0] sm:$0xff] %vm438_vm0, %v2042_v12  ;;  %v795_v18 = vpop.f32.mrb[49].mxu1 }
 0x15a   :  { %v936_v20 = vadd.f32 %v935_v13, %v934_v5  ;;  %v668_v21 = vpop.f32.mrb[50].mxu0  ;;  %v2054_v22 = vpop.f32.mrb[50].mxu1 }
 0x15b   :  { %v1134_v24 = vsel %vm438_vm0, %v1047_v14, 0.0  ;;  %849 = vst.msk [vmem:[%s2314_s2 + $0xc8] sm:$0xff] %vm438_vm0, %v668_v21  ;;  %v937_v28 = vsel %vm438_vm0, %v668_v21, 0.0  ;;  %v1048_v29 = vmul.f32 %v668_v21, %v668_v21  ;;  %v670_v30 = vpop.f32.mrb[51].mxu0  ;;  %881 = vst.msk [vmem:[%s2314_s2 + $0x1c8] sm:$0xff] %vm438_vm0, %v2054_v22  ;;  %v798_v31 = vpop.f32.mrb[51].mxu1 }
 0x15c   :  { %v1135_v32 = vadd.f32 %v1134_v24, %v1133_v9  ;;  %v938_v35 = vadd.f32 %v937_v28, %v936_v20 }
 0x15d   :  { %v1136_v36 = vsel %vm438_vm0, %v1048_v29, 0.0 }
 0x15e   :  { %v1137_v37 = vadd.f32 %v1136_v36, %v1135_v32 }
 0x160   :  { %v673_v38 = vpop.f32.mrb[52].mxu0  ;;  %v2068_v41 = vpop.f32.mrb[52].mxu1 }
 0x161   :  { %850 = vst.msk [vmem:[%s2314_s2 + $0xd0] sm:$0xff] %vm438_vm0, %v673_v38  ;;  %v939_v42 = vsel %vm438_vm0, %v673_v38, 0.0  ;;  %v1049_v43 = vmul.f32 %v673_v38, %v673_v38  ;;  %v675_v44 = vpop.f32.mrb[53].mxu0  ;;  %882 = vst.msk [vmem:[%s2314_s2 + $0x1d0] sm:$0xff] %vm438_vm0, %v2068_v41  ;;  %v803_v46 = vpop.f32.mrb[53].mxu1 }
 0x162   :  { %v940_v48 = vadd.f32 %v939_v42, %v938_v35  ;;  %v676_v51 = vpop.f32.mrb[54].mxu0  ;;  %v2080_v53 = vpop.f32.mrb[54].mxu1 }
 0x163   :  { %v1138_v54 = vsel %vm438_vm0, %v1049_v43, 0.0  ;;  %851 = vst.msk [vmem:[%s2314_s2 + $0xd8] sm:$0xff] %vm438_vm0, %v676_v51  ;;  %v941_v55 = vsel %vm438_vm0, %v676_v51, 0.0  ;;  %v1050_v56 = vmul.f32 %v676_v51, %v676_v51  ;;  %v678_v57 = vpop.f32.mrb[55].mxu0  ;;  %883 = vst.msk [vmem:[%s2314_s2 + $0x1d8] sm:$0xff] %vm438_vm0, %v2080_v53  ;;  %v806_v60 = vpop.f32.mrb[55].mxu1 }
 0x164   :  { %v1139_v61 = vadd.f32 %v1138_v54, %v1137_v37  ;;  %v942_v0 = vadd.f32 %v941_v55, %v940_v48  ;;  %v1055_v54 = vmul.f32 %v1730_v11, %v1730_v11 }
 0x165   :  { %v1140_v1 = vsel %vm438_vm0, %v1050_v56, 0.0 }
 0x166   :  { %v1141_v2 = vadd.f32 %v1140_v1, %v1139_v61 }
 0x168   :  { %v681_v4 = vpop.f32.mrb[56].mxu0  ;;  %v2094_v5 = vpop.f32.mrb[56].mxu1 }
 0x169   :  { %852 = vst.msk [vmem:[%s2314_s2 + $0xe0] sm:$0xff] %vm438_vm0, %v681_v4  ;;  %v943_v7 = vsel %vm438_vm0, %v681_v4, 0.0  ;;  %v1051_v9 = vmul.f32 %v681_v4, %v681_v4  ;;  %v683_v10 = vpop.f32.mrb[57].mxu0  ;;  %884 = vst.msk [vmem:[%s2314_s2 + $0x1e0] sm:$0xff] %vm438_vm0, %v2094_v5  ;;  %v811_v13 = vpop.f32.mrb[57].mxu1  ;;  %v1056_v4 = vmul.f32 %v1741_v16, %v1741_v16 }
 0x16a   :  { %v944_v14 = vadd.f32 %v943_v7, %v942_v0  ;;  %v684_v15 = vpop.f32.mrb[58].mxu0  ;;  %v2106_v18 = vpop.f32.mrb[58].mxu1  ;;  %v1150_v13 = vsel %vm438_vm0, %v1055_v54, 0.0 }
 0x16b   :  { %v1142_v20 = vsel %vm438_vm0, %v1051_v9, 0.0  ;;  %853 = vst.msk [vmem:[%s2314_s2 + $0xe8] sm:$0xff] %vm438_vm0, %v684_v15  ;;  %v945_v21 = vsel %vm438_vm0, %v684_v15, 0.0  ;;  %v1052_v24 = vmul.f32 %v684_v15, %v684_v15  ;;  %v686_v28 = vpop.f32.mrb[59].mxu0  ;;  %885 = vst.msk [vmem:[%s2314_s2 + $0x1e8] sm:$0xff] %vm438_vm0, %v2106_v18  ;;  %v814_v29 = vpop.f32.mrb[59].mxu1  ;;  %v1057_v15 = vmul.f32 %v1756_v27, %v1756_v27 }
 0x16c   :  { %v1143_v30 = vadd.f32 %v1142_v20, %v1141_v2  ;;  %v946_v31 = vadd.f32 %v945_v21, %v944_v14  ;;  %v951_v2 = vsel %vm438_vm0, %v1730_v11, 0.0  ;;  %v953_v14 = vsel %vm438_vm0, %v1741_v16, 0.0 }
 0x16d   :  { %v1144_v32 = vsel %vm438_vm0, %v1052_v24, 0.0  ;;  %v1152_v24 = vsel %vm438_vm0, %v1056_v4, 0.0  ;;  %v955_v11 = vsel %vm438_vm0, %v1756_v27, 0.0  ;;  %v1058_v28 = vmul.f32 %v1768_v34, %v1768_v34 }
 0x16e   :  { %v1145_v35 = vadd.f32 %v1144_v32, %v1143_v30  ;;  %v957_v16 = vsel %vm438_vm0, %v1768_v34, 0.0  ;;  %v1059_v32 = vmul.f32 %v1782_v45, %v1782_v45  ;;  %v959_v27 = vsel %vm438_vm0, %v1782_v45, 0.0 }
 0x16f   :  { %v961_v34 = vsel %vm438_vm0, %v1794_v52, 0.0  ;;  %v963_v45 = vsel %vm438_vm0, %v1808_v63, 0.0 }
 0x170   :  { %v689_v36 = vpop.f32.mrb[60].mxu0  ;;  %v2120_v37 = vpop.f32.mrb[60].mxu1 }
 0x171   :  { %854 = vst.msk [vmem:[%s2314_s2 + $0xf0] sm:$0xff] %vm438_vm0, %v689_v36  ;;  %v947_v38 = vsel %vm438_vm0, %v689_v36, 0.0  ;;  %v1053_v42 = vmul.f32 %v689_v36, %v689_v36  ;;  %v691_v43 = vpop.f32.mrb[61].mxu0  ;;  %886 = vst.msk [vmem:[%s2314_s2 + $0x1f0] sm:$0xff] %vm438_vm0, %v2120_v37  ;;  %v819_v44 = vpop.f32.mrb[61].mxu1 }
 0x172   :  { %v948_v46 = vadd.f32 %v947_v38, %v946_v31  ;;  %v692_v48 = vpop.f32.mrb[62].mxu0  ;;  %v2132_v51 = vpop.f32.mrb[62].mxu1  ;;  %v1154_v31 = vsel %vm438_vm0, %v1057_v15, 0.0  ;;  %v1156_v38 = vsel %vm438_vm0, %v1058_v28, 0.0  ;;  %v1065_v15 = vmul.f32 %v1860_v39, %v1860_v39 }
 0x173   :  { %v1146_v55 = vsel %vm438_vm0, %v1053_v42, 0.0  ;;  %855 = vst.msk [vmem:[%s2314_s2 + $0xf8] sm:$0xff] %vm438_vm0, %v692_v48  ;;  %v949_v56 = vsel %vm438_vm0, %v692_v48, 0.0  ;;  %v1054_v57 = vmul.f32 %v692_v48, %v692_v48  ;;  %v694_v60 = vpop.f32.mrb[63].mxu0  ;;  %887 = vst.msk [vmem:[%s2314_s2 + $0x1f8] sm:$0xff] %vm438_vm0, %v2132_v51  ;;  %v822_v61 = vpop.f32.mrb[63].mxu1  ;;  %v1060_v42 = vmul.f32 %v1794_v52, %v1794_v52 }
 0x174   :  { %v1147_v0 = vadd.f32 %v1146_v55, %v1145_v35  ;;  %v950_v1 = vadd.f32 %v949_v56, %v948_v46  ;;  %v1158_v46 = vsel %vm438_vm0, %v1059_v32, 0.0  ;;  %v1061_v48 = vmul.f32 %v1808_v63, %v1808_v63 }
 0x175   :  { %v1148_v7 = vsel %vm438_vm0, %v1054_v57, 0.0  ;;  %v1160_v56 = vsel %vm438_vm0, %v1060_v42, 0.0  ;;  %v1062_v57 = vmul.f32 %v1820_v6, %v1820_v6  ;;  %v965_v52 = vsel %vm438_vm0, %v1820_v6, 0.0 }
 0x176   :  { %v952_v9 = vadd.f32 %v951_v2, %v950_v1  ;;  %v1149_v10 = vadd.f32 %v1148_v7, %v1147_v0  ;;  %v1162_v0 = vsel %vm438_vm0, %v1061_v48, 0.0  ;;  %v1063_v1 = vmul.f32 %v1834_v19, %v1834_v19 }
 0x177   :  { %v1164_v7 = vsel %vm438_vm0, %v1062_v57, 0.0  ;;  %v967_v63 = vsel %vm438_vm0, %v1834_v19, 0.0  ;;  %v969_v6 = vsel %vm438_vm0, %v1846_v26, 0.0  ;;  %v971_v19 = vsel %vm438_vm0, %v1860_v39, 0.0 }
 0x178   :  { %v954_v20 = vadd.f32 %v953_v14, %v952_v9  ;;  %v1151_v21 = vadd.f32 %v1150_v13, %v1149_v10  ;;  %v1064_v9 = vmul.f32 %v1846_v26, %v1846_v26  ;;  %v1166_v14 = vsel %vm438_vm0, %v1063_v1, 0.0 }
 0x179   :  { %v973_v26 = vsel %vm438_vm0, %v1872_v47, 0.0  ;;  %v975_v39 = vsel %vm438_vm0, %v1886_v59, 0.0  ;;  %v1070_v48 = vmul.f32 %v1924_v25, %v1924_v25 }
 0x17a   :  { %v956_v29 = vadd.f32 %v955_v11, %v954_v20  ;;  %v1153_v30 = vadd.f32 %v1152_v24, %v1151_v21  ;;  %v1168_v24 = vsel %vm438_vm0, %v1064_v9, 0.0  ;;  %v1066_v11 = vmul.f32 %v1872_v47, %v1872_v47 }
 0x17b   :  { %v977_v47 = vsel %vm438_vm0, %v1898_v3, 0.0 }
 0x17c   :  { %v958_v35 = vadd.f32 %v957_v16, %v956_v29  ;;  %v1155_v36 = vadd.f32 %v1154_v31, %v1153_v30  ;;  %v1170_v30 = vsel %vm438_vm0, %v1065_v15, 0.0  ;;  %v1067_v31 = vmul.f32 %v1886_v59, %v1886_v59 }
 0x17d   :  { %v979_v59 = vsel %vm438_vm0, %v1912_v17, 0.0  ;;  %v1075_v15 = vmul.f32 %v1990_v23, %v1990_v23 }
 0x17e   :  { %v960_v43 = vadd.f32 %v959_v27, %v958_v35  ;;  %v1157_v44 = vadd.f32 %v1156_v38, %v1155_v36  ;;  %v1172_v35 = vsel %vm438_vm0, %v1066_v11, 0.0  ;;  %v1068_v36 = vmul.f32 %v1898_v3, %v1898_v3 }
 0x17f   :  { %v1174_v42 = vsel %vm438_vm0, %v1067_v31, 0.0  ;;  %v981_v3 = vsel %vm438_vm0, %v1924_v25, 0.0  ;;  %v985_v25 = vsel %vm438_vm0, %v1950_v49, 0.0 }
 0x180   :  { %v962_v54 = vadd.f32 %v961_v34, %v960_v43  ;;  %v1159_v55 = vadd.f32 %v1158_v46, %v1157_v44  ;;  %v1069_v43 = vmul.f32 %v1912_v17, %v1912_v17  ;;  %v1176_v34 = vsel %vm438_vm0, %v1068_v36, 0.0 }
 0x181   :  { %v983_v17 = vsel %vm438_vm0, %v1938_v40, 0.0 }
 0x182   :  { %v964_v60 = vadd.f32 %v963_v45, %v962_v54  ;;  %v1161_v61 = vadd.f32 %v1160_v56, %v1159_v55  ;;  %v1178_v56 = vsel %vm438_vm0, %v1069_v43, 0.0  ;;  %v1071_v45 = vmul.f32 %v1938_v40, %v1938_v40 }
 0x183   :  { %v987_v40 = vsel %vm438_vm0, %v1964_v62, 0.0  ;;  %v1080_v43 = vmul.f32 %v2054_v22, %v2054_v22 }
 0x184   :  { %v966_v2 = vadd.f32 %v965_v52, %v964_v60  ;;  %v1163_v4 = vadd.f32 %v1162_v0, %v1161_v61  ;;  %v1180_v61 = vsel %vm438_vm0, %v1070_v48, 0.0  ;;  %v1072_v0 = vmul.f32 %v1950_v49, %v1950_v49 }
 0x185   :  { %v989_v49 = vsel %vm438_vm0, %v1976_v8, 0.0 }
 0x186   :  { %v1165_v10 = vadd.f32 %v1164_v7, %v1163_v4  ;;  %v968_v13 = vadd.f32 %v967_v63, %v966_v2  ;;  %v1182_v2 = vsel %vm438_vm0, %v1071_v45, 0.0  ;;  %v1073_v4 = vmul.f32 %v1964_v62, %v1964_v62 }
 0x187   :  { %v1184_v9 = vsel %vm438_vm0, %v1072_v0, 0.0  ;;  %v991_v62 = vsel %vm438_vm0, %v1990_v23, 0.0  ;;  %v995_v23 = vsel %vm438_vm0, %v2016_v50, 0.0 }
 0x188   :  { %v970_v20 = vadd.f32 %v969_v6, %v968_v13  ;;  %v1167_v21 = vadd.f32 %v1166_v14, %v1165_v10  ;;  %v1074_v10 = vmul.f32 %v1976_v8, %v1976_v8  ;;  %v1186_v6 = vsel %vm438_vm0, %v1073_v4, 0.0 }
 0x189   :  { %v993_v8 = vsel %vm438_vm0, %v2002_v33, 0.0  ;;  %v1009_v4 = vsel %vm438_vm0, %v2106_v18, 0.0 }
 0x18a   :  { %v972_v28 = vadd.f32 %v971_v19, %v970_v20  ;;  %v1169_v29 = vadd.f32 %v1168_v24, %v1167_v21  ;;  %v1188_v24 = vsel %vm438_vm0, %v1074_v10, 0.0  ;;  %v1076_v19 = vmul.f32 %v2002_v33, %v2002_v33 }
 0x18b   :  { %v997_v33 = vsel %vm438_vm0, %v2028_v58, 0.0  ;;  %v1086_v10 = vmul.f32 %v2132_v51, %v2132_v51 }
 0x18c   :  { %v974_v16 = vadd.f32 %v973_v26, %v972_v28  ;;  %v1171_v32 = vadd.f32 %v1170_v30, %v1169_v29  ;;  %v1190_v29 = vsel %vm438_vm0, %v1075_v15, 0.0  ;;  %v1077_v30 = vmul.f32 %v2016_v50, %v2016_v50 }
 0x18d   :  { %v999_v50 = vsel %vm438_vm0, %v2042_v12, 0.0 }
 0x18e   :  { %v976_v38 = vadd.f32 %v975_v39, %v974_v16  ;;  %v1173_v27 = vadd.f32 %v1172_v35, %v1171_v32  ;;  %v1192_v16 = vsel %vm438_vm0, %v1076_v19, 0.0  ;;  %v1078_v32 = vmul.f32 %v2028_v58, %v2028_v58 }
 0x18f   :  { %v1194_v36 = vsel %vm438_vm0, %v1077_v30, 0.0  ;;  %v1001_v58 = vsel %vm438_vm0, %v2054_v22, 0.0  ;;  %v1005_v22 = vsel %vm438_vm0, %v2080_v53, 0.0 }
 0x190   :  { %v978_v44 = vadd.f32 %v977_v47, %v976_v38  ;;  %v1175_v46 = vadd.f32 %v1174_v42, %v1173_v27  ;;  %v1079_v38 = vmul.f32 %v2042_v12, %v2042_v12  ;;  %v1196_v47 = vsel %vm438_vm0, %v1078_v32, 0.0 }
 0x191   :  { %v1003_v12 = vsel %vm438_vm0, %v2068_v41, 0.0 }
 0x192   :  { %v980_v54 = vadd.f32 %v979_v59, %v978_v44  ;;  %v1177_v55 = vadd.f32 %v1176_v34, %v1175_v46  ;;  %v1198_v34 = vsel %vm438_vm0, %v1079_v38, 0.0  ;;  %v1081_v59 = vmul.f32 %v2068_v41, %v2068_v41 }
 0x193   :  { %v1007_v41 = vsel %vm438_vm0, %v2094_v5, 0.0 }
 0x194   :  { %v982_v57 = vadd.f32 %v981_v3, %v980_v54  ;;  %v1179_v60 = vadd.f32 %v1178_v56, %v1177_v55  ;;  %v1200_v55 = vsel %vm438_vm0, %v1080_v43, 0.0  ;;  %v1082_v56 = vmul.f32 %v2080_v53, %v2080_v53 }
 0x196   :  { %v984_v52 = vadd.f32 %v983_v17, %v982_v57  ;;  %v1181_v1 = vadd.f32 %v1180_v61, %v1179_v60  ;;  %v1202_v57 = vsel %vm438_vm0, %v1081_v59, 0.0  ;;  %v1083_v60 = vmul.f32 %v2094_v5, %v2094_v5 }
 0x197   :  { %v1204_v0 = vsel %vm438_vm0, %v1082_v56, 0.0 }
 0x198   :  { %v1183_v7 = vadd.f32 %v1182_v2, %v1181_v1  ;;  %v986_v63 = vadd.f32 %v985_v25, %v984_v52  ;;  %v1084_v52 = vmul.f32 %v2106_v18, %v2106_v18  ;;  %v1085_v1 = vmul.f32 %v2120_v37, %v2120_v37 }
 0x199   :  { %v1206_v53 = vsel %vm438_vm0, %v1083_v60, 0.0  ;;  %v1212_v18 = vsel %vm438_vm0, %v1086_v10, 0.0 }
 0x19a   :  { %v1185_v13 = vadd.f32 %v1184_v9, %v1183_v7  ;;  %v988_v14 = vadd.f32 %v987_v40, %v986_v63  ;;  %v1011_v7 = vsel %vm438_vm0, %v2120_v37, 0.0  ;;  %v1208_v5 = vsel %vm438_vm0, %v1084_v52, 0.0 }
 0x19b   :  { %v1210_v40 = vsel %vm438_vm0, %v1085_v1, 0.0 }
 0x19c   :  { %v1187_v20 = vadd.f32 %v1186_v6, %v1185_v13  ;;  %v990_v21 = vadd.f32 %v989_v49, %v988_v14  ;;  %v1013_v6 = vsel %vm438_vm0, %v2132_v51, 0.0 }
 0x19e   :  { %v1189_v11 = vadd.f32 %v1188_v24, %v1187_v20  ;;  %v992_v28 = vadd.f32 %v991_v62, %v990_v21 }
 0x1a0   :  { %v1191_v26 = vadd.f32 %v1190_v29, %v1189_v11  ;;  %v994_v31 = vadd.f32 %v993_v8, %v992_v28 }
 0x1a2   :  { %v1193_v35 = vadd.f32 %v1192_v16, %v1191_v26  ;;  %v996_v39 = vadd.f32 %v995_v23, %v994_v31 }
 0x1a4   :  { %v1195_v27 = vadd.f32 %v1194_v36, %v1193_v35  ;;  %v998_v42 = vadd.f32 %v997_v33, %v996_v39 }
 0x1a6   :  { %v1197_v44 = vadd.f32 %v1196_v47, %v1195_v27  ;;  %v1000_v46 = vadd.f32 %v999_v50, %v998_v42 }
 0x1a8   :  { %v1199_v48 = vadd.f32 %v1198_v34, %v1197_v44  ;;  %v1002_v54 = vadd.f32 %v1001_v58, %v1000_v46 }
 0x1aa   :  { %v1201_v3 = vadd.f32 %v1200_v55, %v1199_v48  ;;  %v1004_v45 = vadd.f32 %v1003_v12, %v1002_v54 }
 0x1ac   :  { %v1203_v61 = vadd.f32 %v1202_v57, %v1201_v3  ;;  %v1006_v17 = vadd.f32 %v1005_v22, %v1004_v45 }
 0x1ae   :  { %v1205_v2 = vadd.f32 %v1204_v0, %v1203_v61  ;;  %v1008_v25 = vadd.f32 %v1007_v41, %v1006_v17 }
 0x1b0   :  { %v1207_v63 = vadd.f32 %v1206_v53, %v1205_v2  ;;  %v1010_v9 = vadd.f32 %v1009_v4, %v1008_v25 }
 0x1b2   :  { %v1209_v13 = vadd.f32 %v1208_v5, %v1207_v63  ;;  %v1012_v14 = vadd.f32 %v1011_v7, %v1010_v9 }
 0x1b4   :  { %v1211_v49 = vadd.f32 %v1210_v40, %v1209_v13  ;;  %v1014_v15 = vadd.f32 %v1013_v6, %v1012_v14 }
 0x1b6   :  { %v1015_v20 = vrot.slane %v1014_v15, 4  ;;  %v1213_v37 = vadd.f32 %v1212_v18, %v1211_v49 }
 0x1b8   :  { %v1016_v21 = vadd.f32 %v1015_v20, %v1014_v15  ;;  %v1214_v24 = vrot.slane %v1213_v37, 4 }
 0x1ba   :  { %v1017_v62 = vrot.slane %v1016_v21, 2  ;;  %v1215_v19 = vadd.f32 %v1214_v24, %v1213_v37 }
 0x1bc   :  { %v1018_v11 = vadd.f32 %v1017_v62, %v1016_v21  ;;  %v1216_v28 = vrot.slane %v1215_v19, 2 }
 0x1be   :  { %v1019_v29 = vrot.slane %v1018_v11, 1  ;;  %v1217_v8 = vadd.f32 %v1216_v28, %v1215_v19 }
 0x1c0   :  { %v1020_v30 = vadd.f32 %v1019_v29, %v1018_v11  ;;  %v1218_v26 = vrot.slane %v1217_v8, 1 }
 0x1c2   :  { %1022 = vst.msk [vmem:[%s2315_s3] sm:$0x1] %vm1021_vm1, %v1020_v30  ;;  %v1219_v51 = vadd.f32 %v1218_v26, %v1217_v8 }
 0x1c4   :  { %1220 = vst.msk [vmem:[%s2315_s3 + $0x1] sm:$0x1] %vm1021_vm1, %v1219_v51 }

// kernel: basic_block_forward.7
= control target key start
LH: loop header
LB: loop body
LE: loop exit
PB: predicated region body
PF: predicated region fallthrough
CT: control target
= control target key end

     0   :  { %v27_v0 = vlaneseq  ;;  %s204_s1 = inlined_call_operand.vmem [shape: f32[1,256], index: 1, kind: input, shape index: {}]   ;;  %s205_s2 = inlined_call_operand.vmem [shape: f32[1,256], index: 2, kind: input, shape index: {}]   ;;  %s206_s0 = inlined_call_operand.vmem [shape: f32[32,256], index: 0, kind: input, shape index: {}]   ;;  %s207_s3 = inlined_call_operand.vmem [shape: f32[32,256], index: 3, kind: input, shape index: {}]   ;;  %s208_s4 = inlined_call_operand.vmem [shape: f32[32,256], index: 4, kind: output, shape index: {}]  }
   0x1   :  { %v25_v2 = vld [vmem:[%s204_s1] sm:$0x3]  ;;  %v18_v6 = vld [vmem:[%s206_s0 + $0x8] sm:$0xff]  ;;  %v19_v8 = vld [vmem:[%s206_s0 + $0x10] sm:$0xff] }
   0x2   :  { %v28_v1 = vshrl.u32 %v27_v0, 7  ;;  %v45_v3 = vld [vmem:[%s205_s2] sm:$0x3]  ;;  %v20_v9 = vld [vmem:[%s206_s0 + $0x18] sm:$0xff]  ;;  %v22_v15 = vld [vmem:[%s206_s0 + $0x28] sm:$0xff] }
   0x3   :  { %v17_v4 = vld [vmem:[%s206_s0] sm:$0xff]  ;;  %v23_v16 = vld [vmem:[%s206_s0 + $0x30] sm:$0xff]  ;;  %v24_v17 = vld [vmem:[%s206_s0 + $0x38] sm:$0xff] }
   0x4   :  { %v29_v5 = vsub.s32 0, %v28_v1  ;;  %v33_v7 = vsub.s32 1, %v28_v1  ;;  %v21_v10 = vld [vmem:[%s206_s0 + $0x20] sm:$0xff]  ;;  %v66_v21 = vld [vmem:[%s207_s3 + $0x8] sm:$0xff]  ;;  %v67_v24 = vld [vmem:[%s207_s3 + $0x10] sm:$0xff] }
   0x5   :  { %v65_v19 = vld [vmem:[%s207_s3] sm:$0xff]  ;;  %v68_v25 = vld [vmem:[%s207_s3 + $0x18] sm:$0xff]  ;;  %v70_v35 = vld [vmem:[%s207_s3 + $0x28] sm:$0xff] }
   0x6   :  { %v30_v11 = vrot.slane %v25_v2, %v29_v5  ;;  %v50_v12 = vrot.slane %v45_v3, %v29_v5  ;;  %v34_v13 = vrot.slane %v25_v2, %v33_v7  ;;  %v54_v14 = vrot.slane %v45_v3, %v33_v7  ;;  %v69_v27 = vld [vmem:[%s207_s3 + $0x20] sm:$0xff]  ;;  %v71_v36 = vld [vmem:[%s207_s3 + $0x30] sm:$0xff]  ;;  %v72_v37 = vld [vmem:[%s207_s3 + $0x38] sm:$0xff] }
   0x8   :  { %v37_v18 = vmul.f32 %v30_v11, %v17_v4  ;;  %v38_v20 = vmul.f32 %v34_v13, %v18_v6  ;;  %v39_v22 = vmul.f32 %v30_v11, %v19_v8  ;;  %v40_v23 = vmul.f32 %v34_v13, %v20_v9 }
   0x9   :  { %v41_v26 = vmul.f32 %v30_v11, %v21_v10  ;;  %v42_v28 = vmul.f32 %v34_v13, %v22_v15  ;;  %v43_v29 = vmul.f32 %v30_v11, %v23_v16  ;;  %v44_v30 = vmul.f32 %v34_v13, %v24_v17 }
   0xa   :  { %v57_v31 = vadd.f32 %v50_v12, %v37_v18  ;;  %v58_v32 = vadd.f32 %v54_v14, %v38_v20  ;;  %v59_v33 = vadd.f32 %v50_v12, %v39_v22  ;;  %v60_v34 = vadd.f32 %v54_v14, %v40_v23 }
   0xb   :  { %v61_v38 = vadd.f32 %v50_v12, %v41_v26  ;;  %v62_v39 = vadd.f32 %v54_v14, %v42_v28  ;;  %v63_v40 = vadd.f32 %v50_v12, %v43_v29  ;;  %v64_v41 = vadd.f32 %v54_v14, %v44_v30 }
   0xc   :  { %v73_v42 = vadd.f32 %v65_v19, %v57_v31  ;;  %v74_v43 = vadd.f32 %v66_v21, %v58_v32  ;;  %v75_v44 = vadd.f32 %v67_v24, %v59_v33  ;;  %v76_v45 = vadd.f32 %v68_v25, %v60_v34 }
   0xd   :  { %v77_v46 = vadd.f32 %v69_v27, %v61_v38  ;;  %v78_v47 = vadd.f32 %v70_v35, %v62_v39  ;;  %v79_v48 = vadd.f32 %v71_v36, %v63_v40  ;;  %v80_v49 = vadd.f32 %v72_v37, %v64_v41 }
   0xe   :  { %v81_v50 = vmax.f32 %v73_v42, 0.0  ;;  %v82_v51 = vmax.f32 %v74_v43, 0.0  ;;  %v83_v52 = vmax.f32 %v75_v44, 0.0  ;;  %v84_v53 = vmax.f32 %v76_v45, 0.0 }
   0xf   :  { %v85_v54 = vmax.f32 %v77_v46, 0.0  ;;  %v86_v55 = vmax.f32 %v78_v47, 0.0  ;;  %v87_v56 = vmax.f32 %v79_v48, 0.0  ;;  %v88_v57 = vmax.f32 %v80_v49, 0.0 }
  0x10   :  { %89 = vst [vmem:[%s208_s4] sm:$0xff] %v81_v50  ;;  %90 = vst [vmem:[%s208_s4 + $0x8] sm:$0xff] %v82_v51 }
  0x11   :  { %91 = vst [vmem:[%s208_s4 + $0x10] sm:$0xff] %v83_v52  ;;  %92 = vst [vmem:[%s208_s4 + $0x18] sm:$0xff] %v84_v53 }
  0x12   :  { %93 = vst [vmem:[%s208_s4 + $0x20] sm:$0xff] %v85_v54  ;;  %94 = vst [vmem:[%s208_s4 + $0x28] sm:$0xff] %v86_v55 }
  0x13   :  { %95 = vst [vmem:[%s208_s4 + $0x30] sm:$0xff] %v87_v56  ;;  %96 = vst [vmem:[%s208_s4 + $0x38] sm:$0xff] %v88_v57 }

</bundles_post_ra>
